<compile_context>
chip_gen: v7x
topology: tpu7x:2x2x1
jax: 0.10.0
libtpu: 0.0.40
codegen_flags: <defaults>
</compile_context>

<pallas_src>
import functools
import math

import jax
import jax.numpy as jnp
from jax.experimental import pallas as pl
from jax.experimental.pallas import tpu as pltpu

# ----------------------------- tiny BERT config ----------------------------
VOCAB = 100
HIDDEN = 32
NUM_LAYERS = 2
NUM_HEADS = 4
HEAD_DIM = HIDDEN // NUM_HEADS
INTERMEDIATE = 64
MAX_POS = 16
TYPE_VOCAB = 2
LN_EPS = 1e-12


# --------------------------- in-kernel helper math ---------------------------
def _ln(x, g, b):
    """LayerNorm over the last (hidden) axis (f32)."""
    mu = jnp.mean(x, axis=-1, keepdims=True)
    var = jnp.mean(jnp.square(x - mu), axis=-1, keepdims=True)
    return (x - mu) * jax.lax.rsqrt(var + LN_EPS) * g + b


def _gelu(x):
    # tanh-approximation of GELU; HF BertModel default is exact erf GELU
    # (differences <1e-3 at these magnitudes).
    # TODO(synk): switch to erf-GELU once Mosaic erf lowering is guaranteed.
    c = math.sqrt(2.0 / math.pi)
    return 0.5 * x * (1.0 + jnp.tanh(c * (x + 0.044715 * x * x * x)))


# ------------------------------ fused BERT kernel ----------------------------
def _bert_kernel(emb_ref, maskb_ref,
                 emb_ln_g_ref, emb_ln_b_ref,
                 wqkv_ref, bqkv_ref, wo_ref, bo_ref,
                 ln1_g_ref, ln1_b_ref,
                 wi_ref, bi_ref, wo2_ref, bo2_ref,
                 ln2_g_ref, ln2_b_ref,
                 pooler_w_ref, pooler_b_ref,
                 seq_ref, pooled_ref,
                 ctx_ref, *, B, S):
    """Whole BERT forward (post-embedding-lookup) in a single VMEM-resident pass.

    emb_ref:    (B*S, H)  summed word+pos+type embeddings (f32)
    maskb_ref:  (B, 1, S) additive attention-mask bias ((1-mask)*-1e4)
    matmul weights (wqkv/wo/wi/wo2/pooler_w) are bf16; biases / LN params f32.
    per-layer weights stacked on a leading NUM_LAYERS axis.
    ctx_ref:    (B, S, H) f32 VMEM scratch for per-head attention outputs.
    """
    H, Hn, Dh = HIDDEN, NUM_HEADS, HEAD_DIM
    bf16 = jnp.bfloat16

    maskb = maskb_ref[...]                                     # (B, 1, S)

    # --- embedding LayerNorm (no residual) ---
    h = _ln(emb_ref[...], emb_ln_g_ref[...], emb_ln_b_ref[...])  # (B*S, H) f32

    for l in range(NUM_LAYERS):
        # ---- self-attention: fused QKV projection (one MXU push) ----
        # 1/sqrt(Dh) is already folded into the Q weights/bias at init time.
        qkv = jnp.dot(h.astype(bf16), wqkv_ref[l],
                      preferred_element_type=jnp.float32) + bqkv_ref[l]  # (B*S,3H)
        q = qkv[:, 0 * H:1 * H].reshape(B, S, H).astype(bf16)
        k = qkv[:, 1 * H:2 * H].reshape(B, S, H).astype(bf16)
        v = qkv[:, 2 * H:3 * H].reshape(B, S, H).astype(bf16)

        # one batched (over B) matmul pair per head; head outputs go straight
        # into the VMEM scratch via static lane-slice stores (no concats).
        for hd in range(Hn):
            sl = slice(hd * Dh, (hd + 1) * Dh)
            s = jnp.einsum('bqd,bkd->bqk', q[..., sl], k[..., sl],
                           preferred_element_type=jnp.float32)   # (B, S, S)
            s = s + maskb                           # broadcast over query rows
            # No max-subtraction: logits here are tiny and the mask bias is
            # -1e4 (not -inf), so exp() is safe in f32 at these magnitudes.
            p = jnp.exp(s)
            p = p * pl.reciprocal(jnp.sum(p, axis=-1, keepdims=True),
                                  approx=True)
            ctx_ref[..., sl] = jnp.einsum('bqk,bkd->bqd', p.astype(bf16),
                                          v[..., sl],
                                          preferred_element_type=jnp.float32)

        ctx = ctx_ref[...].reshape(B * S, H)                     # (B*S, H) f32
        attn_out = jnp.dot(ctx.astype(bf16), wo_ref[l],
                           preferred_element_type=jnp.float32) + bo_ref[l]
        h = _ln(attn_out + h, ln1_g_ref[l], ln1_b_ref[l])

        # ---- feed-forward ----
        inter = _gelu(jnp.dot(h.astype(bf16), wi_ref[l],
                              preferred_element_type=jnp.float32) + bi_ref[l])
        ffn = jnp.dot(inter.astype(bf16), wo2_ref[l],
                      preferred_element_type=jnp.float32) + bo2_ref[l]
        h = _ln(ffn + h, ln2_g_ref[l], ln2_b_ref[l])

    seq_ref[...] = h

    # ---- pooler: dense + tanh on the [CLS] token of each sequence ----
    cls = h.reshape(B, S, H)[:, 0, :]                            # (B, H)
    pooled_ref[...] = jnp.tanh(
        jnp.dot(cls.astype(bf16), pooler_w_ref[...],
                preferred_element_type=jnp.float32) + pooler_b_ref[...])


# ---------------------------- parameter creation ----------------------------
def init_params(key):
    keys = iter(jax.random.split(key, 6 * NUM_LAYERS + 8))

    def nrm(shape):
        return 0.02 * jax.random.normal(next(keys), shape, jnp.float32)

    H, I = HIDDEN, INTERMEDIATE
    scale = 1.0 / math.sqrt(HEAD_DIM)

    layers = {
        "wqkv": [], "bqkv": [], "wo": [], "bo": [],
        "ln1_g": [], "ln1_b": [], "wi": [], "bi": [],
        "wo2": [], "bo2": [], "ln2_g": [], "ln2_b": [],
    }
    for _ in range(NUM_LAYERS):
        wq, wk, wv = nrm((H, H)), nrm((H, H)), nrm((H, H))
        bq = bk = bv = jnp.zeros((H,), jnp.float32)
        # fold the 1/sqrt(head_dim) attention scale into the Q projection
        layers["wqkv"].append(jnp.concatenate([wq * scale, wk, wv], axis=1))
        layers["bqkv"].append(jnp.concatenate([bq * scale, bk, bv])[None, :])
        layers["wo"].append(nrm((H, H)))
        layers["bo"].append(jnp.zeros((1, H), jnp.float32))
        layers["ln1_g"].append(jnp.ones((1, H), jnp.float32))
        layers["ln1_b"].append(jnp.zeros((1, H), jnp.float32))
        layers["wi"].append(nrm((H, I)))
        layers["bi"].append(jnp.zeros((1, I), jnp.float32))
        layers["wo2"].append(nrm((I, H)))
        layers["bo2"].append(jnp.zeros((1, H), jnp.float32))
        layers["ln2_g"].append(jnp.ones((1, H), jnp.float32))
        layers["ln2_b"].append(jnp.zeros((1, H), jnp.float32))

    p = {
        "word_emb": nrm((VOCAB, H)),
        "pos_emb": nrm((MAX_POS, H)),
        "type_emb": nrm((TYPE_VOCAB, H)),
        "emb_ln_g": jnp.ones((1, H), jnp.float32),
        "emb_ln_b": jnp.zeros((1, H), jnp.float32),
        "pooler_w": nrm((H, H)).astype(jnp.bfloat16),   # bf16 MXU operand
        "pooler_b": jnp.zeros((1, H), jnp.float32),
    }
    bf16_weights = {"wqkv", "wo", "wi", "wo2"}
    for name, vals in layers.items():
        stacked = jnp.stack(vals, axis=0)               # leading NUM_LAYERS axis
        p[name] = stacked.astype(jnp.bfloat16) if name in bf16_weights else stacked
    return p


# ------------------------------- BERT forward -------------------------------
def bert_forward(params, input_ids, attention_mask):
    B, S = input_ids.shape
    H = HIDDEN

    # --- embedding lookups (gathers are plain-JAX glue) ---
    word = jnp.take(params["word_emb"], input_ids, axis=0)            # (B,S,H)
    pos = params["pos_emb"][:S][None, :, :]                           # (1,S,H)
    typ = params["type_emb"][0][None, None, :]                        # token_type=0
    emb = (word + pos + typ).reshape(B * S, H).astype(jnp.float32)

    # extended attention mask: (1 - mask) * -10000, shared over heads/queries
    maskb = ((1.0 - attention_mask.astype(jnp.float32)) * -10000.0).reshape(B, 1, S)

    vmem_spec = pl.BlockSpec(memory_space=pltpu.MemorySpace.VMEM)
    kernel = functools.partial(_bert_kernel, B=B, S=S)
    seq_flat, pooled = pl.pallas_call(
        kernel,
        out_shape=(jax.ShapeDtypeStruct((B * S, H), jnp.float32),
                   jax.ShapeDtypeStruct((B, H), jnp.float32)),
        in_specs=[vmem_spec] * 18,
        out_specs=(vmem_spec, vmem_spec),
        scratch_shapes=[pltpu.VMEM((B, S, H), jnp.float32)],
    )(emb, maskb,
      params["emb_ln_g"], params["emb_ln_b"],
      params["wqkv"], params["bqkv"], params["wo"], params["bo"],
      params["ln1_g"], params["ln1_b"],
      params["wi"], params["bi"], params["wo2"], params["bo2"],
      params["ln2_g"], params["ln2_b"],
      params["pooler_w"], params["pooler_b"])

    return seq_flat.reshape(B, S, H), pooled


# ----------------------------------- main ------------------------------------
if __name__ == "__main__":
    key = jax.random.PRNGKey(0)
    k_param, k_ids = jax.random.split(key)

    B, S = 2, 8
    params = init_params(k_param)
    input_ids = jax.random.randint(k_ids, (B, S), 0, VOCAB, dtype=jnp.int32)
    # second sequence has 2 padding positions masked out
    attention_mask = jnp.array(
        [[1, 1, 1, 1, 1, 1, 1, 1],
         [1, 1, 1, 1, 1, 1, 0, 0]], dtype=jnp.int32)

    seq_out, pooled_out = jax.jit(bert_forward)(params, input_ids, attention_mask)
    jax.block_until_ready((seq_out, pooled_out))

    assert seq_out.shape == (B, S, HIDDEN)
    assert pooled_out.shape == (B, HIDDEN)
    assert bool(jnp.all(jnp.isfinite(seq_out)))
    assert bool(jnp.all(jnp.isfinite(pooled_out)))
    print("KERNEL_OK")
</pallas_src>

<mosaic_0001>
module attributes {stable_mosaic.version = 11 : i64} {
  func.func @_bert_kernel(%arg0: memref<16x32xf32, #tpu.memory_space<vmem>>, %arg1: memref<2x1x8xf32, #tpu.memory_space<vmem>>, %arg2: memref<1x32xf32, #tpu.memory_space<vmem>>, %arg3: memref<1x32xf32, #tpu.memory_space<vmem>>, %arg4: memref<2x32x96xbf16, #tpu.memory_space<vmem>>, %arg5: memref<2x1x96xf32, #tpu.memory_space<vmem>>, %arg6: memref<2x32x32xbf16, #tpu.memory_space<vmem>>, %arg7: memref<2x1x32xf32, #tpu.memory_space<vmem>>, %arg8: memref<2x1x32xf32, #tpu.memory_space<vmem>>, %arg9: memref<2x1x32xf32, #tpu.memory_space<vmem>>, %arg10: memref<2x32x64xbf16, #tpu.memory_space<vmem>>, %arg11: memref<2x1x64xf32, #tpu.memory_space<vmem>>, %arg12: memref<2x64x32xbf16, #tpu.memory_space<vmem>>, %arg13: memref<2x1x32xf32, #tpu.memory_space<vmem>>, %arg14: memref<2x1x32xf32, #tpu.memory_space<vmem>>, %arg15: memref<2x1x32xf32, #tpu.memory_space<vmem>>, %arg16: memref<32x32xbf16, #tpu.memory_space<vmem>>, %arg17: memref<1x32xf32, #tpu.memory_space<vmem>>, %arg18: memref<16x32xf32, #tpu.memory_space<vmem>>, %arg19: memref<2x32xf32, #tpu.memory_space<vmem>>, %arg20: memref<2x8x32xf32, #tpu.memory_space<vmem>>) attributes {dimension_semantics = [], scalar_prefetch = 0 : i64, scratch_operands = 1 : i64, tpu.core_type = #tpu.core_type<tc>} {
    %c0 = arith.constant 0 : index
    %c0_0 = arith.constant 0 : index
    %c0_1 = arith.constant 0 : index
    %0 = vector.load %arg1[%c0, %c0_0, %c0_1] : memref<2x1x8xf32, #tpu.memory_space<vmem>>, vector<2x1x8xf32>
    %c0_2 = arith.constant 0 : index
    %c0_3 = arith.constant 0 : index
    %1 = vector.load %arg0[%c0_2, %c0_3] : memref<16x32xf32, #tpu.memory_space<vmem>>, vector<16x32xf32>
    %c0_4 = arith.constant 0 : index
    %c0_5 = arith.constant 0 : index
    %2 = vector.load %arg2[%c0_4, %c0_5] : memref<1x32xf32, #tpu.memory_space<vmem>>, vector<1x32xf32>
    %c0_6 = arith.constant 0 : index
    %c0_7 = arith.constant 0 : index
    %3 = vector.load %arg3[%c0_6, %c0_7] : memref<1x32xf32, #tpu.memory_space<vmem>>, vector<1x32xf32>
    %cst = arith.constant dense<0.000000e+00> : vector<16xf32>
    %4 = vector.multi_reduction <add>, %1, %cst [1] : vector<16x32xf32> to vector<16xf32>
    %5 = vector.shape_cast %4 : vector<16xf32> to vector<16x1xf32>
    %cst_8 = arith.constant 3.200000e+01 : f32
    %6 = vector.broadcast %cst_8 : f32 to vector<16x1xf32>
    %7 = arith.divf %5, %6 : vector<16x1xf32>
    %8 = vector.broadcast %7 : vector<16x1xf32> to vector<16x32xf32>
    %9 = arith.subf %1, %8 : vector<16x32xf32>
    %10 = arith.mulf %9, %9 : vector<16x32xf32>
    %cst_9 = arith.constant dense<0.000000e+00> : vector<16xf32>
    %11 = vector.multi_reduction <add>, %10, %cst_9 [1] : vector<16x32xf32> to vector<16xf32>
    %12 = vector.shape_cast %11 : vector<16xf32> to vector<16x1xf32>
    %cst_10 = arith.constant 3.200000e+01 : f32
    %13 = vector.broadcast %cst_10 : f32 to vector<16x1xf32>
    %14 = arith.divf %12, %13 : vector<16x1xf32>
    %15 = vector.broadcast %7 : vector<16x1xf32> to vector<16x32xf32>
    %16 = arith.subf %1, %15 : vector<16x32xf32>
    %cst_11 = arith.constant 9.99999996E-13 : f32
    %17 = vector.broadcast %cst_11 : f32 to vector<16x1xf32>
    %18 = arith.addf %14, %17 : vector<16x1xf32>
    %19 = math.rsqrt %18 : vector<16x1xf32>
    %20 = vector.broadcast %19 : vector<16x1xf32> to vector<16x32xf32>
    %21 = arith.mulf %16, %20 : vector<16x32xf32>
    %22 = vector.broadcast %2 : vector<1x32xf32> to vector<16x32xf32>
    %23 = arith.mulf %21, %22 : vector<16x32xf32>
    %24 = vector.broadcast %3 : vector<1x32xf32> to vector<16x32xf32>
    %25 = arith.addf %23, %24 : vector<16x32xf32>
    %26 = arith.truncf %25 : vector<16x32xf32> to vector<16x32xbf16>
    %c0_12 = arith.constant 0 : index
    %c0_13 = arith.constant 0 : index
    %c0_14 = arith.constant 0 : index
    %27 = vector.load %arg4[%c0_12, %c0_13, %c0_14] : memref<2x32x96xbf16, #tpu.memory_space<vmem>>, vector<1x32x96xbf16>
    %28 = vector.shape_cast %27 : vector<1x32x96xbf16> to vector<32x96xbf16>
    %cst_15 = arith.constant dense<0.000000e+00> : vector<16x96xf32>
    %29 = tpu.matmul %26, %28, %cst_15 {dimension_numbers = #tpu.dot_dimension_numbers<[1], [0], [0], [1], [0, 0, 1, 1], [], []>} : vector<16x32xbf16>, vector<32x96xbf16>, vector<16x96xf32> -> vector<16x96xf32>
    %c0_16 = arith.constant 0 : index
    %c0_17 = arith.constant 0 : index
    %c0_18 = arith.constant 0 : index
    %30 = vector.load %arg5[%c0_16, %c0_17, %c0_18] : memref<2x1x96xf32, #tpu.memory_space<vmem>>, vector<1x1x96xf32>
    %31 = vector.shape_cast %30 : vector<1x1x96xf32> to vector<1x96xf32>
    %32 = vector.broadcast %31 : vector<1x96xf32> to vector<16x96xf32>
    %33 = arith.addf %29, %32 : vector<16x96xf32>
    %34 = vector.extract_strided_slice %33 {offsets = [0, 0], sizes = [16, 32], strides = [1, 1]} : vector<16x96xf32> to vector<16x32xf32>
    %35 = vector.shape_cast %34 : vector<16x32xf32> to vector<2x8x32xf32>
    %36 = arith.truncf %35 : vector<2x8x32xf32> to vector<2x8x32xbf16>
    %37 = vector.extract_strided_slice %33 {offsets = [0, 32], sizes = [16, 32], strides = [1, 1]} : vector<16x96xf32> to vector<16x32xf32>
    %38 = vector.shape_cast %37 : vector<16x32xf32> to vector<2x8x32xf32>
    %39 = arith.truncf %38 : vector<2x8x32xf32> to vector<2x8x32xbf16>
    %40 = vector.extract_strided_slice %33 {offsets = [0, 64], sizes = [16, 32], strides = [1, 1]} : vector<16x96xf32> to vector<16x32xf32>
    %41 = vector.shape_cast %40 : vector<16x32xf32> to vector<2x8x32xf32>
    %42 = arith.truncf %41 : vector<2x8x32xf32> to vector<2x8x32xbf16>
    %43 = vector.extract_strided_slice %36 {offsets = [0, 0, 0], sizes = [2, 8, 8], strides = [1, 1, 1]} : vector<2x8x32xbf16> to vector<2x8x8xbf16>
    %44 = vector.extract_strided_slice %39 {offsets = [0, 0, 0], sizes = [2, 8, 8], strides = [1, 1, 1]} : vector<2x8x32xbf16> to vector<2x8x8xbf16>
    "tpu.trace_start"() <{level = 10 : i32, message = "bqd,bkd->bqk"}> : () -> ()
    %cst_19 = arith.constant dense<0.000000e+00> : vector<2x8x8xf32>
    %45 = tpu.matmul %43, %44, %cst_19 {dimension_numbers = #tpu.dot_dimension_numbers<[2], [2], [1], [1], [0, 0, 0, 1, 1, 1], [0], [0]>} : vector<2x8x8xbf16>, vector<2x8x8xbf16>, vector<2x8x8xf32> -> vector<2x8x8xf32>
    "tpu.trace_stop"() : () -> ()
    %46 = vector.broadcast %0 : vector<2x1x8xf32> to vector<2x8x8xf32>
    %47 = arith.addf %45, %46 : vector<2x8x8xf32>
    %48 = math.exp %47 : vector<2x8x8xf32>
    %cst_20 = arith.constant dense<0.000000e+00> : vector<2x8xf32>
    %49 = vector.multi_reduction <add>, %48, %cst_20 [2] : vector<2x8x8xf32> to vector<2x8xf32>
    %50 = vector.shape_cast %49 : vector<2x8xf32> to vector<2x8x1xf32>
    %51 = tpu.reciprocal %50 {approx = true} : vector<2x8x1xf32> -> vector<2x8x1xf32>
    %52 = vector.broadcast %51 : vector<2x8x1xf32> to vector<2x8x8xf32>
    %53 = arith.mulf %48, %52 : vector<2x8x8xf32>
    %54 = arith.truncf %53 : vector<2x8x8xf32> to vector<2x8x8xbf16>
    %55 = vector.extract_strided_slice %42 {offsets = [0, 0, 0], sizes = [2, 8, 8], strides = [1, 1, 1]} : vector<2x8x32xbf16> to vector<2x8x8xbf16>
    "tpu.trace_start"() <{level = 10 : i32, message = "bqk,bkd->bqd"}> : () -> ()
    %cst_21 = arith.constant dense<0.000000e+00> : vector<2x8x8xf32>
    %56 = tpu.matmul %54, %55, %cst_21 {dimension_numbers = #tpu.dot_dimension_numbers<[2], [1], [1], [2], [0, 0, 0, 1, 1, 2], [0], [0]>} : vector<2x8x8xbf16>, vector<2x8x8xbf16>, vector<2x8x8xf32> -> vector<2x8x8xf32>
    "tpu.trace_stop"() : () -> ()
    %c0_22 = arith.constant 0 : index
    %c0_23 = arith.constant 0 : index
    %c0_24 = arith.constant 0 : index
    %57 = vector.load %arg20[%c0_22, %c0_23, %c0_24] : memref<2x8x32xf32, #tpu.memory_space<vmem>>, vector<2x8x8xf32>
    tpu.vector_store %arg20[%c0_22, %c0_23, %c0_24], %56 {strides = array<i32>} : memref<2x8x32xf32, #tpu.memory_space<vmem>>, vector<2x8x8xf32>,
    %58 = vector.extract_strided_slice %36 {offsets = [0, 0, 8], sizes = [2, 8, 8], strides = [1, 1, 1]} : vector<2x8x32xbf16> to vector<2x8x8xbf16>
    %59 = vector.extract_strided_slice %39 {offsets = [0, 0, 8], sizes = [2, 8, 8], strides = [1, 1, 1]} : vector<2x8x32xbf16> to vector<2x8x8xbf16>
    "tpu.trace_start"() <{level = 10 : i32, message = "bqd,bkd->bqk"}> : () -> ()
    %cst_25 = arith.constant dense<0.000000e+00> : vector<2x8x8xf32>
    %60 = tpu.matmul %58, %59, %cst_25 {dimension_numbers = #tpu.dot_dimension_numbers<[2], [2], [1], [1], [0, 0, 0, 1, 1, 1], [0], [0]>} : vector<2x8x8xbf16>, vector<2x8x8xbf16>, vector<2x8x8xf32> -> vector<2x8x8xf32>
    "tpu.trace_stop"() : () -> ()
    %61 = vector.broadcast %0 : vector<2x1x8xf32> to vector<2x8x8xf32>
    %62 = arith.addf %60, %61 : vector<2x8x8xf32>
    %63 = math.exp %62 : vector<2x8x8xf32>
    %cst_26 = arith.constant dense<0.000000e+00> : vector<2x8xf32>
    %64 = vector.multi_reduction <add>, %63, %cst_26 [2] : vector<2x8x8xf32> to vector<2x8xf32>
    %65 = vector.shape_cast %64 : vector<2x8xf32> to vector<2x8x1xf32>
    %66 = tpu.reciprocal %65 {approx = true} : vector<2x8x1xf32> -> vector<2x8x1xf32>
    %67 = vector.broadcast %66 : vector<2x8x1xf32> to vector<2x8x8xf32>
    %68 = arith.mulf %63, %67 : vector<2x8x8xf32>
    %69 = arith.truncf %68 : vector<2x8x8xf32> to vector<2x8x8xbf16>
    %70 = vector.extract_strided_slice %42 {offsets = [0, 0, 8], sizes = [2, 8, 8], strides = [1, 1, 1]} : vector<2x8x32xbf16> to vector<2x8x8xbf16>
    "tpu.trace_start"() <{level = 10 : i32, message = "bqk,bkd->bqd"}> : () -> ()
    %cst_27 = arith.constant dense<0.000000e+00> : vector<2x8x8xf32>
    %71 = tpu.matmul %69, %70, %cst_27 {dimension_numbers = #tpu.dot_dimension_numbers<[2], [1], [1], [2], [0, 0, 0, 1, 1, 2], [0], [0]>} : vector<2x8x8xbf16>, vector<2x8x8xbf16>, vector<2x8x8xf32> -> vector<2x8x8xf32>
    "tpu.trace_stop"() : () -> ()
    %c0_28 = arith.constant 0 : index
    %c0_29 = arith.constant 0 : index
    %c8 = arith.constant 8 : index
    %72 = vector.load %arg20[%c0_28, %c0_29, %c8] : memref<2x8x32xf32, #tpu.memory_space<vmem>>, vector<2x8x8xf32>
    tpu.vector_store %arg20[%c0_28, %c0_29, %c8], %71 {strides = array<i32>} : memref<2x8x32xf32, #tpu.memory_space<vmem>>, vector<2x8x8xf32>,
    %73 = vector.extract_strided_slice %36 {offsets = [0, 0, 16], sizes = [2, 8, 8], strides = [1, 1, 1]} : vector<2x8x32xbf16> to vector<2x8x8xbf16>
    %74 = vector.extract_strided_slice %39 {offsets = [0, 0, 16], sizes = [2, 8, 8], strides = [1, 1, 1]} : vector<2x8x32xbf16> to vector<2x8x8xbf16>
    "tpu.trace_start"() <{level = 10 : i32, message = "bqd,bkd->bqk"}> : () -> ()
    %cst_30 = arith.constant dense<0.000000e+00> : vector<2x8x8xf32>
    %75 = tpu.matmul %73, %74, %cst_30 {dimension_numbers = #tpu.dot_dimension_numbers<[2], [2], [1], [1], [0, 0, 0, 1, 1, 1], [0], [0]>} : vector<2x8x8xbf16>, vector<2x8x8xbf16>, vector<2x8x8xf32> -> vector<2x8x8xf32>
    "tpu.trace_stop"() : () -> ()
    %76 = vector.broadcast %0 : vector<2x1x8xf32> to vector<2x8x8xf32>
    %77 = arith.addf %75, %76 : vector<2x8x8xf32>
    %78 = math.exp %77 : vector<2x8x8xf32>
    %cst_31 = arith.constant dense<0.000000e+00> : vector<2x8xf32>
    %79 = vector.multi_reduction <add>, %78, %cst_31 [2] : vector<2x8x8xf32> to vector<2x8xf32>
    %80 = vector.shape_cast %79 : vector<2x8xf32> to vector<2x8x1xf32>
    %81 = tpu.reciprocal %80 {approx = true} : vector<2x8x1xf32> -> vector<2x8x1xf32>
    %82 = vector.broadcast %81 : vector<2x8x1xf32> to vector<2x8x8xf32>
    %83 = arith.mulf %78, %82 : vector<2x8x8xf32>
    %84 = arith.truncf %83 : vector<2x8x8xf32> to vector<2x8x8xbf16>
    %85 = vector.extract_strided_slice %42 {offsets = [0, 0, 16], sizes = [2, 8, 8], strides = [1, 1, 1]} : vector<2x8x32xbf16> to vector<2x8x8xbf16>
    "tpu.trace_start"() <{level = 10 : i32, message = "bqk,bkd->bqd"}> : () -> ()
    %cst_32 = arith.constant dense<0.000000e+00> : vector<2x8x8xf32>
    %86 = tpu.matmul %84, %85, %cst_32 {dimension_numbers = #tpu.dot_dimension_numbers<[2], [1], [1], [2], [0, 0, 0, 1, 1, 2], [0], [0]>} : vector<2x8x8xbf16>, vector<2x8x8xbf16>, vector<2x8x8xf32> -> vector<2x8x8xf32>
    "tpu.trace_stop"() : () -> ()
    %c0_33 = arith.constant 0 : index
    %c0_34 = arith.constant 0 : index
    %c16 = arith.constant 16 : index
    %87 = vector.load %arg20[%c0_33, %c0_34, %c16] : memref<2x8x32xf32, #tpu.memory_space<vmem>>, vector<2x8x8xf32>
    tpu.vector_store %arg20[%c0_33, %c0_34, %c16], %86 {strides = array<i32>} : memref<2x8x32xf32, #tpu.memory_space<vmem>>, vector<2x8x8xf32>,
    %88 = vector.extract_strided_slice %36 {offsets = [0, 0, 24], sizes = [2, 8, 8], strides = [1, 1, 1]} : vector<2x8x32xbf16> to vector<2x8x8xbf16>
    %89 = vector.extract_strided_slice %39 {offsets = [0, 0, 24], sizes = [2, 8, 8], strides = [1, 1, 1]} : vector<2x8x32xbf16> to vector<2x8x8xbf16>
    "tpu.trace_start"() <{level = 10 : i32, message = "bqd,bkd->bqk"}> : () -> ()
    %cst_35 = arith.constant dense<0.000000e+00> : vector<2x8x8xf32>
    %90 = tpu.matmul %88, %89, %cst_35 {dimension_numbers = #tpu.dot_dimension_numbers<[2], [2], [1], [1], [0, 0, 0, 1, 1, 1], [0], [0]>} : vector<2x8x8xbf16>, vector<2x8x8xbf16>, vector<2x8x8xf32> -> vector<2x8x8xf32>
    "tpu.trace_stop"() : () -> ()
    %91 = vector.broadcast %0 : vector<2x1x8xf32> to vector<2x8x8xf32>
    %92 = arith.addf %90, %91 : vector<2x8x8xf32>
    %93 = math.exp %92 : vector<2x8x8xf32>
    %cst_36 = arith.constant dense<0.000000e+00> : vector<2x8xf32>
    %94 = vector.multi_reduction <add>, %93, %cst_36 [2] : vector<2x8x8xf32> to vector<2x8xf32>
    %95 = vector.shape_cast %94 : vector<2x8xf32> to vector<2x8x1xf32>
    %96 = tpu.reciprocal %95 {approx = true} : vector<2x8x1xf32> -> vector<2x8x1xf32>
    %97 = vector.broadcast %96 : vector<2x8x1xf32> to vector<2x8x8xf32>
    %98 = arith.mulf %93, %97 : vector<2x8x8xf32>
    %99 = arith.truncf %98 : vector<2x8x8xf32> to vector<2x8x8xbf16>
    %100 = vector.extract_strided_slice %42 {offsets = [0, 0, 24], sizes = [2, 8, 8], strides = [1, 1, 1]} : vector<2x8x32xbf16> to vector<2x8x8xbf16>
    "tpu.trace_start"() <{level = 10 : i32, message = "bqk,bkd->bqd"}> : () -> ()
    %cst_37 = arith.constant dense<0.000000e+00> : vector<2x8x8xf32>
    %101 = tpu.matmul %99, %100, %cst_37 {dimension_numbers = #tpu.dot_dimension_numbers<[2], [1], [1], [2], [0, 0, 0, 1, 1, 2], [0], [0]>} : vector<2x8x8xbf16>, vector<2x8x8xbf16>, vector<2x8x8xf32> -> vector<2x8x8xf32>
    "tpu.trace_stop"() : () -> ()
    %c0_38 = arith.constant 0 : index
    %c0_39 = arith.constant 0 : index
    %c24 = arith.constant 24 : index
    %102 = vector.load %arg20[%c0_38, %c0_39, %c24] : memref<2x8x32xf32, #tpu.memory_space<vmem>>, vector<2x8x8xf32>
    tpu.vector_store %arg20[%c0_38, %c0_39, %c24], %101 {strides = array<i32>} : memref<2x8x32xf32, #tpu.memory_space<vmem>>, vector<2x8x8xf32>,
    %c0_40 = arith.constant 0 : index
    %c0_41 = arith.constant 0 : index
    %c0_42 = arith.constant 0 : index
    %103 = vector.load %arg20[%c0_40, %c0_41, %c0_42] : memref<2x8x32xf32, #tpu.memory_space<vmem>>, vector<2x8x32xf32>
    %104 = vector.shape_cast %103 : vector<2x8x32xf32> to vector<16x32xf32>
    %105 = arith.truncf %104 : vector<16x32xf32> to vector<16x32xbf16>
    %c0_43 = arith.constant 0 : index
    %c0_44 = arith.constant 0 : index
    %c0_45 = arith.constant 0 : index
    %106 = vector.load %arg6[%c0_43, %c0_44, %c0_45] : memref<2x32x32xbf16, #tpu.memory_space<vmem>>, vector<1x32x32xbf16>
    %107 = vector.shape_cast %106 : vector<1x32x32xbf16> to vector<32x32xbf16>
    %cst_46 = arith.constant dense<0.000000e+00> : vector<16x32xf32>
    %108 = tpu.matmul %105, %107, %cst_46 {dimension_numbers = #tpu.dot_dimension_numbers<[1], [0], [0], [1], [0, 0, 1, 1], [], []>} : vector<16x32xbf16>, vector<32x32xbf16>, vector<16x32xf32> -> vector<16x32xf32>
    %c0_47 = arith.constant 0 : index
    %c0_48 = arith.constant 0 : index
    %c0_49 = arith.constant 0 : index
    %109 = vector.load %arg7[%c0_47, %c0_48, %c0_49] : memref<2x1x32xf32, #tpu.memory_space<vmem>>, vector<1x1x32xf32>
    %110 = vector.shape_cast %109 : vector<1x1x32xf32> to vector<1x32xf32>
    %111 = vector.broadcast %110 : vector<1x32xf32> to vector<16x32xf32>
    %112 = arith.addf %108, %111 : vector<16x32xf32>
    %113 = arith.addf %112, %25 : vector<16x32xf32>
    %c0_50 = arith.constant 0 : index
    %c0_51 = arith.constant 0 : index
    %c0_52 = arith.constant 0 : index
    %114 = vector.load %arg8[%c0_50, %c0_51, %c0_52] : memref<2x1x32xf32, #tpu.memory_space<vmem>>, vector<1x1x32xf32>
    %115 = vector.shape_cast %114 : vector<1x1x32xf32> to vector<1x32xf32>
    %c0_53 = arith.constant 0 : index
    %c0_54 = arith.constant 0 : index
    %c0_55 = arith.constant 0 : index
    %116 = vector.load %arg9[%c0_53, %c0_54, %c0_55] : memref<2x1x32xf32, #tpu.memory_space<vmem>>, vector<1x1x32xf32>
    %117 = vector.shape_cast %116 : vector<1x1x32xf32> to vector<1x32xf32>
    %cst_56 = arith.constant dense<0.000000e+00> : vector<16xf32>
    %118 = vector.multi_reduction <add>, %113, %cst_56 [1] : vector<16x32xf32> to vector<16xf32>
    %119 = vector.shape_cast %118 : vector<16xf32> to vector<16x1xf32>
    %cst_57 = arith.constant 3.200000e+01 : f32
    %120 = vector.broadcast %cst_57 : f32 to vector<16x1xf32>
    %121 = arith.divf %119, %120 : vector<16x1xf32>
    %122 = vector.broadcast %121 : vector<16x1xf32> to vector<16x32xf32>
    %123 = arith.subf %113, %122 : vector<16x32xf32>
    %124 = arith.mulf %123, %123 : vector<16x32xf32>
    %cst_58 = arith.constant dense<0.000000e+00> : vector<16xf32>
    %125 = vector.multi_reduction <add>, %124, %cst_58 [1] : vector<16x32xf32> to vector<16xf32>
    %126 = vector.shape_cast %125 : vector<16xf32> to vector<16x1xf32>
    %cst_59 = arith.constant 3.200000e+01 : f32
    %127 = vector.broadcast %cst_59 : f32 to vector<16x1xf32>
    %128 = arith.divf %126, %127 : vector<16x1xf32>
    %129 = vector.broadcast %121 : vector<16x1xf32> to vector<16x32xf32>
    %130 = arith.subf %113, %129 : vector<16x32xf32>
    %cst_60 = arith.constant 9.99999996E-13 : f32
    %131 = vector.broadcast %cst_60 : f32 to vector<16x1xf32>
    %132 = arith.addf %128, %131 : vector<16x1xf32>
    %133 = math.rsqrt %132 : vector<16x1xf32>
    %134 = vector.broadcast %133 : vector<16x1xf32> to vector<16x32xf32>
    %135 = arith.mulf %130, %134 : vector<16x32xf32>
    %136 = vector.broadcast %115 : vector<1x32xf32> to vector<16x32xf32>
    %137 = arith.mulf %135, %136 : vector<16x32xf32>
    %138 = vector.broadcast %117 : vector<1x32xf32> to vector<16x32xf32>
    %139 = arith.addf %137, %138 : vector<16x32xf32>
    %140 = arith.truncf %139 : vector<16x32xf32> to vector<16x32xbf16>
    %c0_61 = arith.constant 0 : index
    %c0_62 = arith.constant 0 : index
    %c0_63 = arith.constant 0 : index
    %141 = vector.load %arg10[%c0_61, %c0_62, %c0_63] : memref<2x32x64xbf16, #tpu.memory_space<vmem>>, vector<1x32x64xbf16>
    %142 = vector.shape_cast %141 : vector<1x32x64xbf16> to vector<32x64xbf16>
    %cst_64 = arith.constant dense<0.000000e+00> : vector<16x64xf32>
    %143 = tpu.matmul %140, %142, %cst_64 {dimension_numbers = #tpu.dot_dimension_numbers<[1], [0], [0], [1], [0, 0, 1, 1], [], []>} : vector<16x32xbf16>, vector<32x64xbf16>, vector<16x64xf32> -> vector<16x64xf32>
    %c0_65 = arith.constant 0 : index
    %c0_66 = arith.constant 0 : index
    %c0_67 = arith.constant 0 : index
    %144 = vector.load %arg11[%c0_65, %c0_66, %c0_67] : memref<2x1x64xf32, #tpu.memory_space<vmem>>, vector<1x1x64xf32>
    %145 = vector.shape_cast %144 : vector<1x1x64xf32> to vector<1x64xf32>
    %146 = vector.broadcast %145 : vector<1x64xf32> to vector<16x64xf32>
    %147 = arith.addf %143, %146 : vector<16x64xf32>
    %cst_68 = arith.constant 5.000000e-01 : f32
    %148 = vector.broadcast %cst_68 : f32 to vector<16x64xf32>
    %149 = arith.mulf %148, %147 : vector<16x64xf32>
    %cst_69 = arith.constant 4.471500e-02 : f32
    %150 = vector.broadcast %cst_69 : f32 to vector<16x64xf32>
    %151 = arith.mulf %150, %147 : vector<16x64xf32>
    %152 = arith.mulf %151, %147 : vector<16x64xf32>
    %153 = arith.mulf %152, %147 : vector<16x64xf32>
    %154 = arith.addf %147, %153 : vector<16x64xf32>
    %cst_70 = arith.constant 0.797884583 : f32
    %155 = vector.broadcast %cst_70 : f32 to vector<16x64xf32>
    %156 = arith.mulf %155, %154 : vector<16x64xf32>
    %157 = math.tanh %156 : vector<16x64xf32>
    %cst_71 = arith.constant 1.000000e+00 : f32
    %158 = vector.broadcast %cst_71 : f32 to vector<16x64xf32>
    %159 = arith.addf %158, %157 : vector<16x64xf32>
    %160 = arith.mulf %149, %159 : vector<16x64xf32>
    %161 = arith.truncf %160 : vector<16x64xf32> to vector<16x64xbf16>
    %c0_72 = arith.constant 0 : index
    %c0_73 = arith.constant 0 : index
    %c0_74 = arith.constant 0 : index
    %162 = vector.load %arg12[%c0_72, %c0_73, %c0_74] : memref<2x64x32xbf16, #tpu.memory_space<vmem>>, vector<1x64x32xbf16>
    %163 = vector.shape_cast %162 : vector<1x64x32xbf16> to vector<64x32xbf16>
    %cst_75 = arith.constant dense<0.000000e+00> : vector<16x32xf32>
    %164 = tpu.matmul %161, %163, %cst_75 {dimension_numbers = #tpu.dot_dimension_numbers<[1], [0], [0], [1], [0, 0, 1, 1], [], []>} : vector<16x64xbf16>, vector<64x32xbf16>, vector<16x32xf32> -> vector<16x32xf32>
    %c0_76 = arith.constant 0 : index
    %c0_77 = arith.constant 0 : index
    %c0_78 = arith.constant 0 : index
    %165 = vector.load %arg13[%c0_76, %c0_77, %c0_78] : memref<2x1x32xf32, #tpu.memory_space<vmem>>, vector<1x1x32xf32>
    %166 = vector.shape_cast %165 : vector<1x1x32xf32> to vector<1x32xf32>
    %167 = vector.broadcast %166 : vector<1x32xf32> to vector<16x32xf32>
    %168 = arith.addf %164, %167 : vector<16x32xf32>
    %169 = arith.addf %168, %139 : vector<16x32xf32>
    %c0_79 = arith.constant 0 : index
    %c0_80 = arith.constant 0 : index
    %c0_81 = arith.constant 0 : index
    %170 = vector.load %arg14[%c0_79, %c0_80, %c0_81] : memref<2x1x32xf32, #tpu.memory_space<vmem>>, vector<1x1x32xf32>
    %171 = vector.shape_cast %170 : vector<1x1x32xf32> to vector<1x32xf32>
    %c0_82 = arith.constant 0 : index
    %c0_83 = arith.constant 0 : index
    %c0_84 = arith.constant 0 : index
    %172 = vector.load %arg15[%c0_82, %c0_83, %c0_84] : memref<2x1x32xf32, #tpu.memory_space<vmem>>, vector<1x1x32xf32>
    %173 = vector.shape_cast %172 : vector<1x1x32xf32> to vector<1x32xf32>
    %cst_85 = arith.constant dense<0.000000e+00> : vector<16xf32>
    %174 = vector.multi_reduction <add>, %169, %cst_85 [1] : vector<16x32xf32> to vector<16xf32>
    %175 = vector.shape_cast %174 : vector<16xf32> to vector<16x1xf32>
    %cst_86 = arith.constant 3.200000e+01 : f32
    %176 = vector.broadcast %cst_86 : f32 to vector<16x1xf32>
    %177 = arith.divf %175, %176 : vector<16x1xf32>
    %178 = vector.broadcast %177 : vector<16x1xf32> to vector<16x32xf32>
    %179 = arith.subf %169, %178 : vector<16x32xf32>
    %180 = arith.mulf %179, %179 : vector<16x32xf32>
    %cst_87 = arith.constant dense<0.000000e+00> : vector<16xf32>
    %181 = vector.multi_reduction <add>, %180, %cst_87 [1] : vector<16x32xf32> to vector<16xf32>
    %182 = vector.shape_cast %181 : vector<16xf32> to vector<16x1xf32>
    %cst_88 = arith.constant 3.200000e+01 : f32
    %183 = vector.broadcast %cst_88 : f32 to vector<16x1xf32>
    %184 = arith.divf %182, %183 : vector<16x1xf32>
    %185 = vector.broadcast %177 : vector<16x1xf32> to vector<16x32xf32>
    %186 = arith.subf %169, %185 : vector<16x32xf32>
    %cst_89 = arith.constant 9.99999996E-13 : f32
    %187 = vector.broadcast %cst_89 : f32 to vector<16x1xf32>
    %188 = arith.addf %184, %187 : vector<16x1xf32>
    %189 = math.rsqrt %188 : vector<16x1xf32>
    %190 = vector.broadcast %189 : vector<16x1xf32> to vector<16x32xf32>
    %191 = arith.mulf %186, %190 : vector<16x32xf32>
    %192 = vector.broadcast %171 : vector<1x32xf32> to vector<16x32xf32>
    %193 = arith.mulf %191, %192 : vector<16x32xf32>
    %194 = vector.broadcast %173 : vector<1x32xf32> to vector<16x32xf32>
    %195 = arith.addf %193, %194 : vector<16x32xf32>
    %196 = arith.truncf %195 : vector<16x32xf32> to vector<16x32xbf16>
    %c1 = arith.constant 1 : index
    %c0_90 = arith.constant 0 : index
    %c0_91 = arith.constant 0 : index
    %197 = vector.load %arg4[%c1, %c0_90, %c0_91] : memref<2x32x96xbf16, #tpu.memory_space<vmem>>, vector<1x32x96xbf16>
    %198 = vector.shape_cast %197 : vector<1x32x96xbf16> to vector<32x96xbf16>
    %cst_92 = arith.constant dense<0.000000e+00> : vector<16x96xf32>
    %199 = tpu.matmul %196, %198, %cst_92 {dimension_numbers = #tpu.dot_dimension_numbers<[1], [0], [0], [1], [0, 0, 1, 1], [], []>} : vector<16x32xbf16>, vector<32x96xbf16>, vector<16x96xf32> -> vector<16x96xf32>
    %c1_93 = arith.constant 1 : index
    %c0_94 = arith.constant 0 : index
    %c0_95 = arith.constant 0 : index
    %200 = vector.load %arg5[%c1_93, %c0_94, %c0_95] : memref<2x1x96xf32, #tpu.memory_space<vmem>>, vector<1x1x96xf32>
    %201 = vector.shape_cast %200 : vector<1x1x96xf32> to vector<1x96xf32>
    %202 = vector.broadcast %201 : vector<1x96xf32> to vector<16x96xf32>
    %203 = arith.addf %199, %202 : vector<16x96xf32>
    %204 = vector.extract_strided_slice %203 {offsets = [0, 0], sizes = [16, 32], strides = [1, 1]} : vector<16x96xf32> to vector<16x32xf32>
    %205 = vector.shape_cast %204 : vector<16x32xf32> to vector<2x8x32xf32>
    %206 = arith.truncf %205 : vector<2x8x32xf32> to vector<2x8x32xbf16>
    %207 = vector.extract_strided_slice %203 {offsets = [0, 32], sizes = [16, 32], strides = [1, 1]} : vector<16x96xf32> to vector<16x32xf32>
    %208 = vector.shape_cast %207 : vector<16x32xf32> to vector<2x8x32xf32>
    %209 = arith.truncf %208 : vector<2x8x32xf32> to vector<2x8x32xbf16>
    %210 = vector.extract_strided_slice %203 {offsets = [0, 64], sizes = [16, 32], strides = [1, 1]} : vector<16x96xf32> to vector<16x32xf32>
    %211 = vector.shape_cast %210 : vector<16x32xf32> to vector<2x8x32xf32>
    %212 = arith.truncf %211 : vector<2x8x32xf32> to vector<2x8x32xbf16>
    %213 = vector.extract_strided_slice %206 {offsets = [0, 0, 0], sizes = [2, 8, 8], strides = [1, 1, 1]} : vector<2x8x32xbf16> to vector<2x8x8xbf16>
    %214 = vector.extract_strided_slice %209 {offsets = [0, 0, 0], sizes = [2, 8, 8], strides = [1, 1, 1]} : vector<2x8x32xbf16> to vector<2x8x8xbf16>
    "tpu.trace_start"() <{level = 10 : i32, message = "bqd,bkd->bqk"}> : () -> ()
    %cst_96 = arith.constant dense<0.000000e+00> : vector<2x8x8xf32>
    %215 = tpu.matmul %213, %214, %cst_96 {dimension_numbers = #tpu.dot_dimension_numbers<[2], [2], [1], [1], [0, 0, 0, 1, 1, 1], [0], [0]>} : vector<2x8x8xbf16>, vector<2x8x8xbf16>, vector<2x8x8xf32> -> vector<2x8x8xf32>
    "tpu.trace_stop"() : () -> ()
    %216 = vector.broadcast %0 : vector<2x1x8xf32> to vector<2x8x8xf32>
    %217 = arith.addf %215, %216 : vector<2x8x8xf32>
    %218 = math.exp %217 : vector<2x8x8xf32>
    %cst_97 = arith.constant dense<0.000000e+00> : vector<2x8xf32>
    %219 = vector.multi_reduction <add>, %218, %cst_97 [2] : vector<2x8x8xf32> to vector<2x8xf32>
    %220 = vector.shape_cast %219 : vector<2x8xf32> to vector<2x8x1xf32>
    %221 = tpu.reciprocal %220 {approx = true} : vector<2x8x1xf32> -> vector<2x8x1xf32>
    %222 = vector.broadcast %221 : vector<2x8x1xf32> to vector<2x8x8xf32>
    %223 = arith.mulf %218, %222 : vector<2x8x8xf32>
    %224 = arith.truncf %223 : vector<2x8x8xf32> to vector<2x8x8xbf16>
    %225 = vector.extract_strided_slice %212 {offsets = [0, 0, 0], sizes = [2, 8, 8], strides = [1, 1, 1]} : vector<2x8x32xbf16> to vector<2x8x8xbf16>
    "tpu.trace_start"() <{level = 10 : i32, message = "bqk,bkd->bqd"}> : () -> ()
    %cst_98 = arith.constant dense<0.000000e+00> : vector<2x8x8xf32>
    %226 = tpu.matmul %224, %225, %cst_98 {dimension_numbers = #tpu.dot_dimension_numbers<[2], [1], [1], [2], [0, 0, 0, 1, 1, 2], [0], [0]>} : vector<2x8x8xbf16>, vector<2x8x8xbf16>, vector<2x8x8xf32> -> vector<2x8x8xf32>
    "tpu.trace_stop"() : () -> ()
    %c0_99 = arith.constant 0 : index
    %c0_100 = arith.constant 0 : index
    %c0_101 = arith.constant 0 : index
    %227 = vector.load %arg20[%c0_99, %c0_100, %c0_101] : memref<2x8x32xf32, #tpu.memory_space<vmem>>, vector<2x8x8xf32>
    tpu.vector_store %arg20[%c0_99, %c0_100, %c0_101], %226 {strides = array<i32>} : memref<2x8x32xf32, #tpu.memory_space<vmem>>, vector<2x8x8xf32>,
    %228 = vector.extract_strided_slice %206 {offsets = [0, 0, 8], sizes = [2, 8, 8], strides = [1, 1, 1]} : vector<2x8x32xbf16> to vector<2x8x8xbf16>
    %229 = vector.extract_strided_slice %209 {offsets = [0, 0, 8], sizes = [2, 8, 8], strides = [1, 1, 1]} : vector<2x8x32xbf16> to vector<2x8x8xbf16>
    "tpu.trace_start"() <{level = 10 : i32, message = "bqd,bkd->bqk"}> : () -> ()
    %cst_102 = arith.constant dense<0.000000e+00> : vector<2x8x8xf32>
    %230 = tpu.matmul %228, %229, %cst_102 {dimension_numbers = #tpu.dot_dimension_numbers<[2], [2], [1], [1], [0, 0, 0, 1, 1, 1], [0], [0]>} : vector<2x8x8xbf16>, vector<2x8x8xbf16>, vector<2x8x8xf32> -> vector<2x8x8xf32>
    "tpu.trace_stop"() : () -> ()
    %231 = vector.broadcast %0 : vector<2x1x8xf32> to vector<2x8x8xf32>
    %232 = arith.addf %230, %231 : vector<2x8x8xf32>
    %233 = math.exp %232 : vector<2x8x8xf32>
    %cst_103 = arith.constant dense<0.000000e+00> : vector<2x8xf32>
    %234 = vector.multi_reduction <add>, %233, %cst_103 [2] : vector<2x8x8xf32> to vector<2x8xf32>
    %235 = vector.shape_cast %234 : vector<2x8xf32> to vector<2x8x1xf32>
    %236 = tpu.reciprocal %235 {approx = true} : vector<2x8x1xf32> -> vector<2x8x1xf32>
    %237 = vector.broadcast %236 : vector<2x8x1xf32> to vector<2x8x8xf32>
    %238 = arith.mulf %233, %237 : vector<2x8x8xf32>
    %239 = arith.truncf %238 : vector<2x8x8xf32> to vector<2x8x8xbf16>
    %240 = vector.extract_strided_slice %212 {offsets = [0, 0, 8], sizes = [2, 8, 8], strides = [1, 1, 1]} : vector<2x8x32xbf16> to vector<2x8x8xbf16>
    "tpu.trace_start"() <{level = 10 : i32, message = "bqk,bkd->bqd"}> : () -> ()
    %cst_104 = arith.constant dense<0.000000e+00> : vector<2x8x8xf32>
    %241 = tpu.matmul %239, %240, %cst_104 {dimension_numbers = #tpu.dot_dimension_numbers<[2], [1], [1], [2], [0, 0, 0, 1, 1, 2], [0], [0]>} : vector<2x8x8xbf16>, vector<2x8x8xbf16>, vector<2x8x8xf32> -> vector<2x8x8xf32>
    "tpu.trace_stop"() : () -> ()
    %c0_105 = arith.constant 0 : index
    %c0_106 = arith.constant 0 : index
    %c8_107 = arith.constant 8 : index
    %242 = vector.load %arg20[%c0_105, %c0_106, %c8_107] : memref<2x8x32xf32, #tpu.memory_space<vmem>>, vector<2x8x8xf32>
    tpu.vector_store %arg20[%c0_105, %c0_106, %c8_107], %241 {strides = array<i32>} : memref<2x8x32xf32, #tpu.memory_space<vmem>>, vector<2x8x8xf32>,
    %243 = vector.extract_strided_slice %206 {offsets = [0, 0, 16], sizes = [2, 8, 8], strides = [1, 1, 1]} : vector<2x8x32xbf16> to vector<2x8x8xbf16>
    %244 = vector.extract_strided_slice %209 {offsets = [0, 0, 16], sizes = [2, 8, 8], strides = [1, 1, 1]} : vector<2x8x32xbf16> to vector<2x8x8xbf16>
    "tpu.trace_start"() <{level = 10 : i32, message = "bqd,bkd->bqk"}> : () -> ()
    %cst_108 = arith.constant dense<0.000000e+00> : vector<2x8x8xf32>
    %245 = tpu.matmul %243, %244, %cst_108 {dimension_numbers = #tpu.dot_dimension_numbers<[2], [2], [1], [1], [0, 0, 0, 1, 1, 1], [0], [0]>} : vector<2x8x8xbf16>, vector<2x8x8xbf16>, vector<2x8x8xf32> -> vector<2x8x8xf32>
    "tpu.trace_stop"() : () -> ()
    %246 = vector.broadcast %0 : vector<2x1x8xf32> to vector<2x8x8xf32>
    %247 = arith.addf %245, %246 : vector<2x8x8xf32>
    %248 = math.exp %247 : vector<2x8x8xf32>
    %cst_109 = arith.constant dense<0.000000e+00> : vector<2x8xf32>
    %249 = vector.multi_reduction <add>, %248, %cst_109 [2] : vector<2x8x8xf32> to vector<2x8xf32>
    %250 = vector.shape_cast %249 : vector<2x8xf32> to vector<2x8x1xf32>
    %251 = tpu.reciprocal %250 {approx = true} : vector<2x8x1xf32> -> vector<2x8x1xf32>
    %252 = vector.broadcast %251 : vector<2x8x1xf32> to vector<2x8x8xf32>
    %253 = arith.mulf %248, %252 : vector<2x8x8xf32>
    %254 = arith.truncf %253 : vector<2x8x8xf32> to vector<2x8x8xbf16>
    %255 = vector.extract_strided_slice %212 {offsets = [0, 0, 16], sizes = [2, 8, 8], strides = [1, 1, 1]} : vector<2x8x32xbf16> to vector<2x8x8xbf16>
    "tpu.trace_start"() <{level = 10 : i32, message = "bqk,bkd->bqd"}> : () -> ()
    %cst_110 = arith.constant dense<0.000000e+00> : vector<2x8x8xf32>
    %256 = tpu.matmul %254, %255, %cst_110 {dimension_numbers = #tpu.dot_dimension_numbers<[2], [1], [1], [2], [0, 0, 0, 1, 1, 2], [0], [0]>} : vector<2x8x8xbf16>, vector<2x8x8xbf16>, vector<2x8x8xf32> -> vector<2x8x8xf32>
    "tpu.trace_stop"() : () -> ()
    %c0_111 = arith.constant 0 : index
    %c0_112 = arith.constant 0 : index
    %c16_113 = arith.constant 16 : index
    %257 = vector.load %arg20[%c0_111, %c0_112, %c16_113] : memref<2x8x32xf32, #tpu.memory_space<vmem>>, vector<2x8x8xf32>
    tpu.vector_store %arg20[%c0_111, %c0_112, %c16_113], %256 {strides = array<i32>} : memref<2x8x32xf32, #tpu.memory_space<vmem>>, vector<2x8x8xf32>,
    %258 = vector.extract_strided_slice %206 {offsets = [0, 0, 24], sizes = [2, 8, 8], strides = [1, 1, 1]} : vector<2x8x32xbf16> to vector<2x8x8xbf16>
    %259 = vector.extract_strided_slice %209 {offsets = [0, 0, 24], sizes = [2, 8, 8], strides = [1, 1, 1]} : vector<2x8x32xbf16> to vector<2x8x8xbf16>
    "tpu.trace_start"() <{level = 10 : i32, message = "bqd,bkd->bqk"}> : () -> ()
    %cst_114 = arith.constant dense<0.000000e+00> : vector<2x8x8xf32>
    %260 = tpu.matmul %258, %259, %cst_114 {dimension_numbers = #tpu.dot_dimension_numbers<[2], [2], [1], [1], [0, 0, 0, 1, 1, 1], [0], [0]>} : vector<2x8x8xbf16>, vector<2x8x8xbf16>, vector<2x8x8xf32> -> vector<2x8x8xf32>
    "tpu.trace_stop"() : () -> ()
    %261 = vector.broadcast %0 : vector<2x1x8xf32> to vector<2x8x8xf32>
    %262 = arith.addf %260, %261 : vector<2x8x8xf32>
    %263 = math.exp %262 : vector<2x8x8xf32>
    %cst_115 = arith.constant dense<0.000000e+00> : vector<2x8xf32>
    %264 = vector.multi_reduction <add>, %263, %cst_115 [2] : vector<2x8x8xf32> to vector<2x8xf32>
    %265 = vector.shape_cast %264 : vector<2x8xf32> to vector<2x8x1xf32>
    %266 = tpu.reciprocal %265 {approx = true} : vector<2x8x1xf32> -> vector<2x8x1xf32>
    %267 = vector.broadcast %266 : vector<2x8x1xf32> to vector<2x8x8xf32>
    %268 = arith.mulf %263, %267 : vector<2x8x8xf32>
    %269 = arith.truncf %268 : vector<2x8x8xf32> to vector<2x8x8xbf16>
    %270 = vector.extract_strided_slice %212 {offsets = [0, 0, 24], sizes = [2, 8, 8], strides = [1, 1, 1]} : vector<2x8x32xbf16> to vector<2x8x8xbf16>
    "tpu.trace_start"() <{level = 10 : i32, message = "bqk,bkd->bqd"}> : () -> ()
    %cst_116 = arith.constant dense<0.000000e+00> : vector<2x8x8xf32>
    %271 = tpu.matmul %269, %270, %cst_116 {dimension_numbers = #tpu.dot_dimension_numbers<[2], [1], [1], [2], [0, 0, 0, 1, 1, 2], [0], [0]>} : vector<2x8x8xbf16>, vector<2x8x8xbf16>, vector<2x8x8xf32> -> vector<2x8x8xf32>
    "tpu.trace_stop"() : () -> ()
    %c0_117 = arith.constant 0 : index
    %c0_118 = arith.constant 0 : index
    %c24_119 = arith.constant 24 : index
    %272 = vector.load %arg20[%c0_117, %c0_118, %c24_119] : memref<2x8x32xf32, #tpu.memory_space<vmem>>, vector<2x8x8xf32>
    tpu.vector_store %arg20[%c0_117, %c0_118, %c24_119], %271 {strides = array<i32>} : memref<2x8x32xf32, #tpu.memory_space<vmem>>, vector<2x8x8xf32>,
    %c0_120 = arith.constant 0 : index
    %c0_121 = arith.constant 0 : index
    %c0_122 = arith.constant 0 : index
    %273 = vector.load %arg20[%c0_120, %c0_121, %c0_122] : memref<2x8x32xf32, #tpu.memory_space<vmem>>, vector<2x8x32xf32>
    %274 = vector.shape_cast %273 : vector<2x8x32xf32> to vector<16x32xf32>
    %275 = arith.truncf %274 : vector<16x32xf32> to vector<16x32xbf16>
    %c1_123 = arith.constant 1 : index
    %c0_124 = arith.constant 0 : index
    %c0_125 = arith.constant 0 : index
    %276 = vector.load %arg6[%c1_123, %c0_124, %c0_125] : memref<2x32x32xbf16, #tpu.memory_space<vmem>>, vector<1x32x32xbf16>
    %277 = vector.shape_cast %276 : vector<1x32x32xbf16> to vector<32x32xbf16>
    %cst_126 = arith.constant dense<0.000000e+00> : vector<16x32xf32>
    %278 = tpu.matmul %275, %277, %cst_126 {dimension_numbers = #tpu.dot_dimension_numbers<[1], [0], [0], [1], [0, 0, 1, 1], [], []>} : vector<16x32xbf16>, vector<32x32xbf16>, vector<16x32xf32> -> vector<16x32xf32>
    %c1_127 = arith.constant 1 : index
    %c0_128 = arith.constant 0 : index
    %c0_129 = arith.constant 0 : index
    %279 = vector.load %arg7[%c1_127, %c0_128, %c0_129] : memref<2x1x32xf32, #tpu.memory_space<vmem>>, vector<1x1x32xf32>
    %280 = vector.shape_cast %279 : vector<1x1x32xf32> to vector<1x32xf32>
    %281 = vector.broadcast %280 : vector<1x32xf32> to vector<16x32xf32>
    %282 = arith.addf %278, %281 : vector<16x32xf32>
    %283 = arith.addf %282, %195 : vector<16x32xf32>
    %c1_130 = arith.constant 1 : index
    %c0_131 = arith.constant 0 : index
    %c0_132 = arith.constant 0 : index
    %284 = vector.load %arg8[%c1_130, %c0_131, %c0_132] : memref<2x1x32xf32, #tpu.memory_space<vmem>>, vector<1x1x32xf32>
    %285 = vector.shape_cast %284 : vector<1x1x32xf32> to vector<1x32xf32>
    %c1_133 = arith.constant 1 : index
    %c0_134 = arith.constant 0 : index
    %c0_135 = arith.constant 0 : index
    %286 = vector.load %arg9[%c1_133, %c0_134, %c0_135] : memref<2x1x32xf32, #tpu.memory_space<vmem>>, vector<1x1x32xf32>
    %287 = vector.shape_cast %286 : vector<1x1x32xf32> to vector<1x32xf32>
    %cst_136 = arith.constant dense<0.000000e+00> : vector<16xf32>
    %288 = vector.multi_reduction <add>, %283, %cst_136 [1] : vector<16x32xf32> to vector<16xf32>
    %289 = vector.shape_cast %288 : vector<16xf32> to vector<16x1xf32>
    %cst_137 = arith.constant 3.200000e+01 : f32
    %290 = vector.broadcast %cst_137 : f32 to vector<16x1xf32>
    %291 = arith.divf %289, %290 : vector<16x1xf32>
    %292 = vector.broadcast %291 : vector<16x1xf32> to vector<16x32xf32>
    %293 = arith.subf %283, %292 : vector<16x32xf32>
    %294 = arith.mulf %293, %293 : vector<16x32xf32>
    %cst_138 = arith.constant dense<0.000000e+00> : vector<16xf32>
    %295 = vector.multi_reduction <add>, %294, %cst_138 [1] : vector<16x32xf32> to vector<16xf32>
    %296 = vector.shape_cast %295 : vector<16xf32> to vector<16x1xf32>
    %cst_139 = arith.constant 3.200000e+01 : f32
    %297 = vector.broadcast %cst_139 : f32 to vector<16x1xf32>
    %298 = arith.divf %296, %297 : vector<16x1xf32>
    %299 = vector.broadcast %291 : vector<16x1xf32> to vector<16x32xf32>
    %300 = arith.subf %283, %299 : vector<16x32xf32>
    %cst_140 = arith.constant 9.99999996E-13 : f32
    %301 = vector.broadcast %cst_140 : f32 to vector<16x1xf32>
    %302 = arith.addf %298, %301 : vector<16x1xf32>
    %303 = math.rsqrt %302 : vector<16x1xf32>
    %304 = vector.broadcast %303 : vector<16x1xf32> to vector<16x32xf32>
    %305 = arith.mulf %300, %304 : vector<16x32xf32>
    %306 = vector.broadcast %285 : vector<1x32xf32> to vector<16x32xf32>
    %307 = arith.mulf %305, %306 : vector<16x32xf32>
    %308 = vector.broadcast %287 : vector<1x32xf32> to vector<16x32xf32>
    %309 = arith.addf %307, %308 : vector<16x32xf32>
    %310 = arith.truncf %309 : vector<16x32xf32> to vector<16x32xbf16>
    %c1_141 = arith.constant 1 : index
    %c0_142 = arith.constant 0 : index
    %c0_143 = arith.constant 0 : index
    %311 = vector.load %arg10[%c1_141, %c0_142, %c0_143] : memref<2x32x64xbf16, #tpu.memory_space<vmem>>, vector<1x32x64xbf16>
    %312 = vector.shape_cast %311 : vector<1x32x64xbf16> to vector<32x64xbf16>
    %cst_144 = arith.constant dense<0.000000e+00> : vector<16x64xf32>
    %313 = tpu.matmul %310, %312, %cst_144 {dimension_numbers = #tpu.dot_dimension_numbers<[1], [0], [0], [1], [0, 0, 1, 1], [], []>} : vector<16x32xbf16>, vector<32x64xbf16>, vector<16x64xf32> -> vector<16x64xf32>
    %c1_145 = arith.constant 1 : index
    %c0_146 = arith.constant 0 : index
    %c0_147 = arith.constant 0 : index
    %314 = vector.load %arg11[%c1_145, %c0_146, %c0_147] : memref<2x1x64xf32, #tpu.memory_space<vmem>>, vector<1x1x64xf32>
    %315 = vector.shape_cast %314 : vector<1x1x64xf32> to vector<1x64xf32>
    %316 = vector.broadcast %315 : vector<1x64xf32> to vector<16x64xf32>
    %317 = arith.addf %313, %316 : vector<16x64xf32>
    %cst_148 = arith.constant 5.000000e-01 : f32
    %318 = vector.broadcast %cst_148 : f32 to vector<16x64xf32>
    %319 = arith.mulf %318, %317 : vector<16x64xf32>
    %cst_149 = arith.constant 4.471500e-02 : f32
    %320 = vector.broadcast %cst_149 : f32 to vector<16x64xf32>
    %321 = arith.mulf %320, %317 : vector<16x64xf32>
    %322 = arith.mulf %321, %317 : vector<16x64xf32>
    %323 = arith.mulf %322, %317 : vector<16x64xf32>
    %324 = arith.addf %317, %323 : vector<16x64xf32>
    %cst_150 = arith.constant 0.797884583 : f32
    %325 = vector.broadcast %cst_150 : f32 to vector<16x64xf32>
    %326 = arith.mulf %325, %324 : vector<16x64xf32>
    %327 = math.tanh %326 : vector<16x64xf32>
    %cst_151 = arith.constant 1.000000e+00 : f32
    %328 = vector.broadcast %cst_151 : f32 to vector<16x64xf32>
    %329 = arith.addf %328, %327 : vector<16x64xf32>
    %330 = arith.mulf %319, %329 : vector<16x64xf32>
    %331 = arith.truncf %330 : vector<16x64xf32> to vector<16x64xbf16>
    %c1_152 = arith.constant 1 : index
    %c0_153 = arith.constant 0 : index
    %c0_154 = arith.constant 0 : index
    %332 = vector.load %arg12[%c1_152, %c0_153, %c0_154] : memref<2x64x32xbf16, #tpu.memory_space<vmem>>, vector<1x64x32xbf16>
    %333 = vector.shape_cast %332 : vector<1x64x32xbf16> to vector<64x32xbf16>
    %cst_155 = arith.constant dense<0.000000e+00> : vector<16x32xf32>
    %334 = tpu.matmul %331, %333, %cst_155 {dimension_numbers = #tpu.dot_dimension_numbers<[1], [0], [0], [1], [0, 0, 1, 1], [], []>} : vector<16x64xbf16>, vector<64x32xbf16>, vector<16x32xf32> -> vector<16x32xf32>
    %c1_156 = arith.constant 1 : index
    %c0_157 = arith.constant 0 : index
    %c0_158 = arith.constant 0 : index
    %335 = vector.load %arg13[%c1_156, %c0_157, %c0_158] : memref<2x1x32xf32, #tpu.memory_space<vmem>>, vector<1x1x32xf32>
    %336 = vector.shape_cast %335 : vector<1x1x32xf32> to vector<1x32xf32>
    %337 = vector.broadcast %336 : vector<1x32xf32> to vector<16x32xf32>
    %338 = arith.addf %334, %337 : vector<16x32xf32>
    %339 = arith.addf %338, %309 : vector<16x32xf32>
    %c1_159 = arith.constant 1 : index
    %c0_160 = arith.constant 0 : index
    %c0_161 = arith.constant 0 : index
    %340 = vector.load %arg14[%c1_159, %c0_160, %c0_161] : memref<2x1x32xf32, #tpu.memory_space<vmem>>, vector<1x1x32xf32>
    %341 = vector.shape_cast %340 : vector<1x1x32xf32> to vector<1x32xf32>
    %c1_162 = arith.constant 1 : index
    %c0_163 = arith.constant 0 : index
    %c0_164 = arith.constant 0 : index
    %342 = vector.load %arg15[%c1_162, %c0_163, %c0_164] : memref<2x1x32xf32, #tpu.memory_space<vmem>>, vector<1x1x32xf32>
    %343 = vector.shape_cast %342 : vector<1x1x32xf32> to vector<1x32xf32>
    %cst_165 = arith.constant dense<0.000000e+00> : vector<16xf32>
    %344 = vector.multi_reduction <add>, %339, %cst_165 [1] : vector<16x32xf32> to vector<16xf32>
    %345 = vector.shape_cast %344 : vector<16xf32> to vector<16x1xf32>
    %cst_166 = arith.constant 3.200000e+01 : f32
    %346 = vector.broadcast %cst_166 : f32 to vector<16x1xf32>
    %347 = arith.divf %345, %346 : vector<16x1xf32>
    %348 = vector.broadcast %347 : vector<16x1xf32> to vector<16x32xf32>
    %349 = arith.subf %339, %348 : vector<16x32xf32>
    %350 = arith.mulf %349, %349 : vector<16x32xf32>
    %cst_167 = arith.constant dense<0.000000e+00> : vector<16xf32>
    %351 = vector.multi_reduction <add>, %350, %cst_167 [1] : vector<16x32xf32> to vector<16xf32>
    %352 = vector.shape_cast %351 : vector<16xf32> to vector<16x1xf32>
    %cst_168 = arith.constant 3.200000e+01 : f32
    %353 = vector.broadcast %cst_168 : f32 to vector<16x1xf32>
    %354 = arith.divf %352, %353 : vector<16x1xf32>
    %355 = vector.broadcast %347 : vector<16x1xf32> to vector<16x32xf32>
    %356 = arith.subf %339, %355 : vector<16x32xf32>
    %cst_169 = arith.constant 9.99999996E-13 : f32
    %357 = vector.broadcast %cst_169 : f32 to vector<16x1xf32>
    %358 = arith.addf %354, %357 : vector<16x1xf32>
    %359 = math.rsqrt %358 : vector<16x1xf32>
    %360 = vector.broadcast %359 : vector<16x1xf32> to vector<16x32xf32>
    %361 = arith.mulf %356, %360 : vector<16x32xf32>
    %362 = vector.broadcast %341 : vector<1x32xf32> to vector<16x32xf32>
    %363 = arith.mulf %361, %362 : vector<16x32xf32>
    %364 = vector.broadcast %343 : vector<1x32xf32> to vector<16x32xf32>
    %365 = arith.addf %363, %364 : vector<16x32xf32>
    %c0_170 = arith.constant 0 : index
    %c0_171 = arith.constant 0 : index
    %366 = vector.load %arg18[%c0_170, %c0_171] : memref<16x32xf32, #tpu.memory_space<vmem>>, vector<16x32xf32>
    tpu.vector_store %arg18[%c0_170, %c0_171], %365 {strides = array<i32>} : memref<16x32xf32, #tpu.memory_space<vmem>>, vector<16x32xf32>,
    %367 = vector.shape_cast %365 : vector<16x32xf32> to vector<2x8x32xf32>
    %368 = vector.extract_strided_slice %367 {offsets = [0, 0, 0], sizes = [2, 1, 32], strides = [1, 1, 1]} : vector<2x8x32xf32> to vector<2x1x32xf32>
    %369 = vector.shape_cast %368 : vector<2x1x32xf32> to vector<2x32xf32>
    %370 = arith.truncf %369 : vector<2x32xf32> to vector<2x32xbf16>
    %c0_172 = arith.constant 0 : index
    %c0_173 = arith.constant 0 : index
    %371 = vector.load %arg16[%c0_172, %c0_173] : memref<32x32xbf16, #tpu.memory_space<vmem>>, vector<32x32xbf16>
    %cst_174 = arith.constant dense<0.000000e+00> : vector<2x32xf32>
    %372 = tpu.matmul %370, %371, %cst_174 {dimension_numbers = #tpu.dot_dimension_numbers<[1], [0], [0], [1], [0, 0, 1, 1], [], []>} : vector<2x32xbf16>, vector<32x32xbf16>, vector<2x32xf32> -> vector<2x32xf32>
    %c0_175 = arith.constant 0 : index
    %c0_176 = arith.constant 0 : index
    %373 = vector.load %arg17[%c0_175, %c0_176] : memref<1x32xf32, #tpu.memory_space<vmem>>, vector<1x32xf32>
    %374 = vector.broadcast %373 : vector<1x32xf32> to vector<2x32xf32>
    %375 = arith.addf %372, %374 : vector<2x32xf32>
    %376 = math.tanh %375 : vector<2x32xf32>
    %c0_177 = arith.constant 0 : index
    %c0_178 = arith.constant 0 : index
    %377 = vector.load %arg19[%c0_177, %c0_178] : memref<2x32xf32, #tpu.memory_space<vmem>>, vector<2x32xf32>
    tpu.vector_store %arg19[%c0_177, %c0_178], %376 {strides = array<i32>} : memref<2x32xf32, #tpu.memory_space<vmem>>, vector<2x32xf32>,
    return
  }
}

</mosaic_0001>

<bundles_post_ra>
// kernel: bert_forward.1
= control target key start
LH: loop header
LB: loop body
LE: loop exit
PB: predicated region body
PF: predicated region fallthrough
CT: control target
= control target key end

     0   :  { %s4191_s0 = inlined_call_operand.vmem [shape: f32[16,32], index: 0, kind: input, shape index: {}]   ;;  %s4192_s1 = inlined_call_operand.vmem [shape: f32[2,1,8], index: 1, kind: input, shape index: {}]   ;;  %s4193_s2 = inlined_call_operand.vmem [shape: f32[1,32], index: 2, kind: input, shape index: {}]   ;;  %s4194_s3 = inlined_call_operand.vmem [shape: f32[1,32], index: 3, kind: input, shape index: {}]   ;;  %s4195_s4 = inlined_call_operand.vmem [shape: bf16[2,32,96], index: 4, kind: input, shape index: {}]   ;;  %s4196_s5 = inlined_call_operand.vmem [shape: f32[2,1,96], index: 5, kind: input, shape index: {}]   ;;  %s4197_s6 = inlined_call_operand.vmem [shape: bf16[2,32,32], index: 6, kind: input, shape index: {}]   ;;  %s4198_s7 = inlined_call_operand.vmem [shape: f32[2,1,32], index: 7, kind: input, shape index: {}]   ;;  %s4199_s8 = inlined_call_operand.vmem [shape: f32[2,1,32], index: 8, kind: input, shape index: {}]   ;;  %s4200_s9 = inlined_call_operand.vmem [shape: f32[2,1,32], index: 9, kind: input, shape index: {}]   ;;  %s4201_s10 = inlined_call_operand.vmem [shape: bf16[2,32,64], index: 10, kind: input, shape index: {}]   ;;  %s4202_s11 = inlined_call_operand.vmem [shape: f32[2,1,64], index: 11, kind: input, shape index: {}]   ;;  %s4203_s12 = inlined_call_operand.vmem [shape: bf16[2,64,32], index: 12, kind: input, shape index: {}]   ;;  %s4204_s13 = inlined_call_operand.vmem [shape: f32[2,1,32], index: 13, kind: input, shape index: {}]   ;;  %s4205_s14 = inlined_call_operand.vmem [shape: f32[2,1,32], index: 14, kind: input, shape index: {}]   ;;  %s4206_s15 = inlined_call_operand.vmem [shape: f32[2,1,32], index: 15, kind: input, shape index: {}]   ;;  %s4207_s16 = inlined_call_operand.vmem [shape: bf16[32,32], index: 16, kind: input, shape index: {}]   ;;  %s4208_s17 = inlined_call_operand.vmem [shape: f32[1,32], index: 17, kind: input, shape index: {}]   ;;  %s4209_s18 = inlined_call_operand.hbm [shape: f32[16,32], index: 18, kind: output, shape index: {0}]   ;;  %s4210_s19 = inlined_call_operand.hbm [shape: f32[2,32], index: 19, kind: output, shape index: {1}]  }
   0x1   :  { %4229 = sst [smem:[#allocation9_spill]] %s4191_s0 }
   0x2   :  { %4230 = sst [smem:[#allocation10_spill]] %s4192_s1 }
   0x3   :  { %4231 = sst [smem:[#allocation11_spill]] %s4193_s2 }
   0x4   :  { %4232 = sst [smem:[#allocation12_spill]] %s4194_s3 }
   0x5   :  { %25 = vsyncpa [#allocation4], 0  ;;  %s4233_s20 = sld [smem:[#allocation9_spill]]  ;;  %vm70_vm0 = vcmask 261120  }
   0xb   :  { %v66_v0 = vld [vmem:[%s4233_s20] sm:$0xff]  ;;  %v67_v1 = vld [vmem:[%s4233_s20 + $0x8] sm:$0xff] }
   0xc   :  { %v71_v2 = vsel %vm70_vm0, %v66_v0, 0.0  ;;  %v74_v3 = vsel %vm70_vm0, %v67_v1, 0.0 }
   0xd   :  { %72 = vadd.xlane.f32.xlu0 %v71_v2 }
  0x11   :  { %75 = vadd.xlane.f32.xlu0 %v74_v3 }
  0x12   :  { %26 = vsyncpa [#allocation6], 0  ;;  %v3313_v14 = vld [vmem:[%s4195_s4] sm:$0xff]   ;;  %v3479_v15 = vmov 0.0   ;;  %v3314_v16 = vld [vmem:[%s4195_s4 + $0x8] sm:$0xff]   ;;  %vm3480_vm1 = vmmov 0  }
  0x13   :  { %3022 = vmatprep.subr.bf16.mxu0 %v3479_v15  ;;  %3030 = vmatprep.subr.bf16.mxu1 %v3479_v15  ;;  %s4234_s26 = sld [smem:[#allocation11_spill]]  ;;  %s4235_s29 = sld [smem:[#allocation12_spill]]  ;;  %v2817_v34 = vld [vmem:[%s4196_s5] ss:$0 sm:$0xff]  ;;  %vm199_vm2 = vcmask 64512   ;;  %vm316_vm3 = vcmask 1043456  }
  0x14   :  { %3023 = vmatpush3.bf16.msra.mxu0 %v3313_v14  ;;  %3026 = vmatprep.mubr.msk.bf16.mxu0 %vm3480_vm1, %v3479_v15  ;;  %s3481_s20 = smov 96   ;;  %s4236_s22 = sld [smem:[#allocation10_spill]]  ;;  %vm630_vm4 = vcmask 130112   ;;  %vm853_vm5 = vcmask 195712   ;;  %vm1076_vm6 = vcmask 261312   ;;  %vm1321_vm7 = vcmask 523264  }
  0x15   :  { %3024 = vmatprep.subr.bf16.mxu0 %v3479_v15  ;;  %3032 = vmatprep.mubr.msk.bf16.mxu1 %vm3480_vm1, %v3479_v15  ;;  %s3482_s24 = smov 64   ;;  %s3483_s25 = smov 88   ;;  %vm2724_vm8 = vcmask 1041409  }
  0x16   :  { %s3484_s3 = smov 120   ;;  %s3486_s27 = smov 80  }
  0x17   :  { %s4227_s28 = smov 112   ;;  %s4223_s0 = smov 72  }
  0x18   :  { %3025 = vmatpush3.bf16.msra.mxu0 %v3314_v16  ;;  %s4219_s30 = smov 104   ;;  %s4217_s21 = smov 40  }
  0x19   :  { %3036 = vmatprep.subr.bf16.mxu0 %v3479_v15  ;;  %v2815_v25 = vld [vmem:[%s4234_s26] ss:$0 sm:$0xff]  ;;  %s3485_s26 = smov 56   ;;  %s4215_s1 = smov 8  }
  0x1a   :  { %v2816_v29 = vld [vmem:[%s4235_s29] ss:$0 sm:$0xff]  ;;  %v3668_v49 = vld [vmem:[%s4236_s22 + $0x1] ss:$0 sm:$0xff]  ;;  %s4225_s29 = smov 48   ;;  %s4213_s2 = smov 16  }
  0x1b   :  { %v3663_v47 = vld [vmem:[%s4236_s22] ss:$0 sm:$0xff]  ;;  %s4241_s23 = smov 40  }
  0x9a   :  { %v73_v4 = vpop.xlane.xlu0 %72 }
  0x9b   :  { %v78_v5 = vmul.f32 0.03125, %v73_v4 }
  0x9d   :  { %v80_v6 = vsub.f32 %v66_v0, %v78_v5 }
  0x9e   :  { %v76_v7 = vpop.xlane.xlu0 %75 }
  0x9f   :  { %v79_v8 = vmul.f32 0.03125, %v76_v7  ;;  %v82_v9 = vmul.f32 %v80_v6, %v80_v6 }
  0xa1   :  { %v81_v10 = vsub.f32 %v67_v1, %v79_v8  ;;  %v84_v11 = vsel %vm70_vm0, %v82_v9, 0.0 }
  0xa2   :  { %85 = vadd.xlane.f32.xlu1 %v84_v11 }
  0xa3   :  { %v83_v12 = vmul.f32 %v81_v10, %v81_v10 }
  0xa5   :  { %v87_v13 = vsel %vm70_vm0, %v83_v12, 0.0 }
  0xa6   :  { %88 = vadd.xlane.f32.xlu1 %v87_v13 }
 0x12f   :  { %v86_v17 = vpop.xlane.xlu1 %85 }
 0x130   :  { %v90_v18 = vmul.f32 0.03125, %v86_v17 }
 0x132   :  { %v92_v19 = vadd.f32 1e-12, %v90_v18 }
 0x133   :  { %v89_v20 = vpop.xlane.xlu1 %88 }
 0x134   :  { %3335 = vrsqrt.f32 %v92_v19  ;;  %v91_v21 = vmul.f32 0.03125, %v89_v20 }
 0x136   :  { %v93_v22 = vadd.f32 1e-12, %v91_v21 }
 0x138   :  { %3337 = vrsqrt.f32 %v93_v22 }
 0x13e   :  { %v3336_v23 = vpop.eup %3335 }
 0x13f   :  { %v96_v24 = vmul.f32 %v3336_v23, %v80_v6 }
 0x141   :  { %v104_v28 = vmul.f32 %v2815_v25, %v96_v24 }
 0x142   :  { %v3338_v26 = vpop.eup %3337 }
 0x143   :  { %v97_v27 = vmul.f32 %v3338_v26, %v81_v10  ;;  %v3628_v31 = vadd.f32 %v2816_v29, %v104_v28 }
 0x145   :  { %v105_v30 = vmul.f32 %v2815_v25, %v97_v27 }
 0x147   :  { %v3630_v32 = vadd.f32 %v2816_v29, %v105_v30 }
 0x149   :  { %v114_v33 = vpack.c.bf16 %v3630_v32, %v3628_v31 }
 0x14b   :  { %3027 = vmatmul.mubr.msk.bf16.vlgmr.msra.gmra.mrb[0].mxu0 %vm70_vm0, %v114_v33 }
 0x14c   :  { %3038 = vmatprep.mubr.msk.bf16.mxu0 %vm3480_vm1, %v3479_v15 }
 0x21e   :  { %v175_v35 = vpop.f32.mrb[0].mxu0 }
 0x21f   :  { %v176_v36 = vadd.f32 %v2817_v34, %v175_v35  ;;  %v3028_v37 = vpop.f32.mrb[1].mxu0 }
 0x220   :  { %v178_v38 = vpop.f32.mrb[2].mxu0 }
 0x221   :  { %v3640_v39 = vpack.c.bf16 %v176_v36, %v176_v36  ;;  %v179_v40 = vadd.f32 %v2817_v34, %v178_v38  ;;  %v3029_v41 = vpop.f32.mrb[3].mxu0 }
 0x223   :  { %v3642_v42 = vpack.c.bf16 %v179_v40, %v179_v40  ;;  %197 = vrot.lane.b32.xlu0 %v3640_v39, %s3481_s20 }
 0x225   :  { %247 = vrot.lane.b32.xlu1 %v3642_v42, %s3481_s20 }
 0x295   :  { %v198_v43 = vpop.permute.xlu0 %197 }
 0x296   :  { %v204_v44 = vsel %vm199_vm2, %v198_v43, 0 }
 0x297   :  { %3031 = vmatpush3.bf16.xpose.msra.mxu1 %v204_v44  ;;  %v248_v45 = vpop.permute.xlu1 %247 }
 0x298   :  { %v253_v46 = vsel %vm199_vm2, %v248_v45, 0  ;;  %3042 = vmatprep.subr.bf16.mxu1 %v3479_v15 }
 0x299   :  { %3037 = vmatpush3.bf16.xpose.msra.mxu0 %v253_v46 }
 0x29a   :  { %3048 = vmatprep.subr.bf16.mxu0 %v3479_v15 }
 0x29e   :  { %3033 = vmatmul.mubr.msk.bf16.vlgmr.msra.gmra.mrb[0].mxu1 %vm199_vm2, %v3640_v39 }
 0x29f   :  { %3044 = vmatprep.mubr.msk.bf16.mxu1 %vm3480_vm1, %v3479_v15 }
 0x2a0   :  { %3039 = vmatmul.mubr.msk.bf16.vlgmr.msra.gmra.mrb[4].mxu0 %vm199_vm2, %v3642_v42 }
 0x2a1   :  { %3050 = vmatprep.mubr.msk.bf16.mxu0 %vm3480_vm1, %v3479_v15 }
 0x371   :  { %v240_v48 = vpop.f32.mrb[0].mxu1 }
 0x372   :  { %v241_v50 = vadd.f32 %v3663_v47, %v240_v48  ;;  %v3034_v51 = vpop.f32.mrb[1].mxu1 }
 0x373   :  { %v243_v52 = vpop.f32.mrb[2].mxu1  ;;  %v289_v53 = vpop.f32.mrb[4].mxu0 }
 0x374   :  { %v295_v54 = vmul.f32 1.442695, %v241_v50  ;;  %v290_v55 = vadd.f32 %v3668_v49, %v289_v53  ;;  %v3035_v56 = vpop.f32.mrb[3].mxu1  ;;  %v3040_v57 = vpop.f32.mrb[5].mxu0 }
 0x375   :  { %v292_v58 = vpop.f32.mrb[6].mxu0 }
 0x376   :  { %3339 = vpow2.f32 %v295_v54  ;;  %v297_v59 = vmul.f32 1.442695, %v290_v55  ;;  %v3041_v60 = vpop.f32.mrb[7].mxu0 }
 0x378   :  { %3341 = vpow2.f32 %v297_v59 }
 0x380   :  { %v3340_v61 = vpop.eup %3339 }
 0x381   :  { %v299_v62 = vsel %vm199_vm2, %v3340_v61, 0.0 }
 0x382   :  { %v3342_v63 = vpop.eup %3341  ;;  %300 = vadd.xlane.f32.xlu1 %v299_v62 }
 0x383   :  { %v302_v0 = vsel %vm199_vm2, %v3342_v63, 0.0 }
 0x384   :  { %303 = vadd.xlane.f32.xlu0 %v302_v0 }
 0x393   :  { %360 = vrot.lane.b32.xlu1 %v3642_v42, %s3482_s24 }
 0x397   :  { %412 = vrot.lane.b32.xlu1 %v3640_v39, %s3483_s25 }
 0x39a   :  { %311 = vrot.lane.b32.xlu0 %v3640_v39, %s3482_s24 }
 0x39b   :  { %462 = vrot.lane.b32.xlu1 %v3642_v42, %s3483_s25 }
 0x39e   :  { %410 = vrot.lane.b32.xlu0 %v3640_v39, %s3484_s3 }
 0x39f   :  { %460 = vrot.lane.b32.xlu1 %v3642_v42, %s3484_s3 }
 0x3a2   :  { %526 = vrot.lane.b32.xlu0 %v3640_v39, %s3485_s26 }
 0x3a3   :  { %574 = vrot.lane.b32.xlu1 %v3642_v42, %s3485_s26 }
 0x40f   :  { %v301_v1 = vpop.xlane.xlu1 %300 }
 0x410   :  { %3343 = vrcp.f32 %v301_v1 }
 0x411   :  { %v304_v2 = vpop.xlane.xlu0 %303 }
 0x412   :  { %3345 = vrcp.f32 %v304_v2 }
 0x413   :  { %v361_v3 = vpop.permute.xlu1 %360 }
 0x414   :  { %v366_v4 = vsel %vm316_vm3, %v361_v3, 0 }
 0x415   :  { %v312_v5 = vpop.permute.xlu0 %311  ;;  %3049 = vmatpush3.bf16.msra.mxu0 %v366_v4 }
 0x416   :  { %v318_v6 = vsel %vm316_vm3, %v312_v5, 0  ;;  %3060 = vmatprep.subr.bf16.mxu0 %v3479_v15 }
 0x417   :  { %3043 = vmatpush3.bf16.msra.mxu1 %v318_v6  ;;  %v413_v7 = vpop.permute.xlu1 %412 }
 0x418   :  { %3054 = vmatprep.subr.bf16.mxu1 %v3479_v15  ;;  %v418_v16 = vsel %vm199_vm2, %v413_v7, 0 }
 0x419   :  { %v411_v14 = vpop.permute.xlu0 %410 }
 0x41a   :  { %v3344_v8 = vpop.eup %3343 }
 0x41b   :  { %v307_v9 = vmul.f32 %v3344_v8, %v3340_v61  ;;  %v463_v10 = vpop.permute.xlu1 %462 }
 0x41c   :  { %v3346_v11 = vpop.eup %3345  ;;  %v468_v19 = vsel %vm199_vm2, %v463_v10, 0 }
 0x41d   :  { %v308_v12 = vmul.f32 %v3346_v11, %v3342_v63  ;;  %v309_v13 = vpack.c.bf16 %v307_v9, %v307_v9  ;;  %v527_v20 = vpop.permute.xlu0 %526 }
 0x41e   :  { %v532_v22 = vsel %vm316_vm3, %v527_v20, 0 }
 0x41f   :  { %3045 = vmatmul.mubr.msk.bf16.vlgmr.msra.gmra.mrb[4].mxu1 %vm199_vm2, %v309_v13  ;;  %v310_v17 = vpack.c.bf16 %v308_v12, %v308_v12  ;;  %v461_v18 = vpop.permute.xlu1 %460 }
 0x420   :  { %3055 = vmatpush3.bf16.xpose.msra.mxu1 %v418_v16  ;;  %3056 = vmatprep.mubr.msk.bf16.mxu1 %vm3480_vm1, %v3479_v15 }
 0x421   :  { %3051 = vmatmul.mubr.msk.bf16.vlgmr.msra.gmra.mrb[8].mxu0 %vm199_vm2, %v310_v17  ;;  %3066 = vmatprep.subr.bf16.mxu1 %v3479_v15 }
 0x422   :  { %3061 = vmatpush3.bf16.xpose.msra.mxu0 %v468_v19  ;;  %3062 = vmatprep.mubr.msk.bf16.mxu0 %vm3480_vm1, %v3479_v15 }
 0x423   :  { %3072 = vmatprep.subr.bf16.mxu0 %v3479_v15  ;;  %v575_v21 = vpop.permute.xlu1 %574 }
 0x424   :  { %v580_v23 = vsel %vm316_vm3, %v575_v21, 0 }
 0x427   :  { %3057 = vmatmul.mubr.msk.bf16.vlgmr.msra.gmra.mrb[8].mxu1 %vm199_vm2, %v411_v14 }
 0x428   :  { %3067 = vmatpush3.bf16.msra.mxu1 %v532_v22  ;;  %3068 = vmatprep.mubr.msk.bf16.mxu1 %vm3480_vm1, %v3479_v15 }
 0x429   :  { %3063 = vmatmul.mubr.msk.bf16.vlgmr.msra.gmra.mrb[12].mxu0 %vm199_vm2, %v461_v18  ;;  %3078 = vmatprep.subr.bf16.mxu1 %v3479_v15 }
 0x42a   :  { %3073 = vmatpush3.bf16.msra.mxu0 %v580_v23  ;;  %3074 = vmatprep.mubr.msk.bf16.mxu0 %vm3480_vm1, %v3479_v15 }
 0x42b   :  { %3084 = vmatprep.subr.bf16.mxu0 %v3479_v15 }
 0x4f2   :  { %v354_v24 = vpop.f32.mrb[4].mxu1 }
 0x4f3   :  { %408 = vst.msk [vmem:[#allocation2] sm:$0xff] %vm199_vm2, %v354_v24  ;;  %v3046_v25 = vpop.f32.mrb[5].mxu1 }
 0x4f4   :  { %v357_v26 = vpop.f32.mrb[6].mxu1  ;;  %v402_v27 = vpop.f32.mrb[8].mxu0 }
 0x4f5   :  { %409 = vst.msk [vmem:[#allocation2 + $0x8] sm:$0xff] %vm199_vm2, %v402_v27  ;;  %v3047_v28 = vpop.f32.mrb[7].mxu1  ;;  %v3052_v29 = vpop.f32.mrb[9].mxu0 }
 0x4f6   :  { %v405_v30 = vpop.f32.mrb[10].mxu0 }
 0x4f7   :  { %v3053_v33 = vpop.f32.mrb[11].mxu0 }
 0x4fa   :  { %v454_v34 = vpop.f32.mrb[8].mxu1 }
 0x4fb   :  { %v455_v35 = vadd.f32 %v3663_v47, %v454_v34  ;;  %v3058_v36 = vpop.f32.mrb[9].mxu1 }
 0x4fc   :  { %v457_v37 = vpop.f32.mrb[10].mxu1  ;;  %v504_v38 = vpop.f32.mrb[12].mxu0 }
 0x4fd   :  { %v510_v40 = vmul.f32 1.442695, %v455_v35  ;;  %v505_v41 = vadd.f32 %v3668_v49, %v504_v38  ;;  %v3059_v43 = vpop.f32.mrb[11].mxu1  ;;  %v3064_v44 = vpop.f32.mrb[13].mxu0 }
 0x4fe   :  { %v507_v45 = vpop.f32.mrb[14].mxu0 }
 0x4ff   :  { %3347 = vpow2.f32 %v510_v40  ;;  %v512_v46 = vmul.f32 1.442695, %v505_v41  ;;  %v3065_v48 = vpop.f32.mrb[15].mxu0 }
 0x501   :  { %3349 = vpow2.f32 %v512_v46 }
 0x509   :  { %v3348_v50 = vpop.eup %3347 }
 0x50a   :  { %v514_v51 = vsel %vm199_vm2, %v3348_v50, 0.0 }
 0x50b   :  { %v3350_v52 = vpop.eup %3349  ;;  %515 = vadd.xlane.f32.xlu0 %v514_v51 }
 0x50c   :  { %v517_v53 = vsel %vm199_vm2, %v3350_v52, 0.0 }
 0x50d   :  { %518 = vadd.xlane.f32.xlu1 %v517_v53 }
 0x51e   :  { %685 = vrot.lane.b32.xlu1 %v3642_v42, %s3486_s27 }
 0x521   :  { %635 = vrot.lane.b32.xlu0 %v3640_v39, %s3486_s27 }
 0x522   :  { %683 = vrot.lane.b32.xlu1 %v3642_v42, %s4227_s28 }
 0x525   :  { %633 = vrot.lane.b32.xlu0 %v3640_v39, %s4227_s28 }
 0x526   :  { %797 = vrot.lane.b32.xlu1 %v3642_v42, %s4225_s29 }
 0x529   :  { %749 = vrot.lane.b32.xlu0 %v3640_v39, %s4225_s29  ;;  %s4244_s29 = smov 24  }
 0x598   :  { %v516_v54 = vpop.xlane.xlu0 %515 }
 0x599   :  { %3351 = vrcp.f32 %v516_v54 }
 0x59a   :  { %v519_v55 = vpop.xlane.xlu1 %518 }
 0x59b   :  { %3353 = vrcp.f32 %v519_v55 }
 0x59c   :  { %v636_v56 = vpop.permute.xlu0 %635 }
 0x59d   :  { %v641_v0 = vsel %vm199_vm2, %v636_v56, 0 }
 0x59e   :  { %v686_v58 = vpop.permute.xlu1 %685 }
 0x59f   :  { %v691_v3 = vsel %vm199_vm2, %v686_v58, 0 }
 0x5a0   :  { %v634_v63 = vpop.permute.xlu0 %633 }
 0x5a2   :  { %v684_v2 = vpop.permute.xlu1 %683 }
 0x5a3   :  { %v3352_v57 = vpop.eup %3351 }
 0x5a4   :  { %v522_v59 = vmul.f32 %v3352_v57, %v3348_v50  ;;  %v750_v4 = vpop.permute.xlu0 %749 }
 0x5a5   :  { %v3354_v60 = vpop.eup %3353  ;;  %v755_v6 = vsel %vm316_vm3, %v750_v4, 0 }
 0x5a6   :  { %v523_v61 = vmul.f32 %v3354_v60, %v3350_v52  ;;  %v524_v62 = vpack.c.bf16 %v522_v59, %v522_v59  ;;  %v798_v5 = vpop.permute.xlu1 %797 }
 0x5a7   :  { %v803_v7 = vsel %vm316_vm3, %v798_v5, 0 }
 0x5a8   :  { %3069 = vmatmul.mubr.msk.bf16.vlgmr.msra.gmra.mrb[12].mxu1 %vm199_vm2, %v524_v62  ;;  %v525_v1 = vpack.c.bf16 %v523_v61, %v523_v61 }
 0x5a9   :  { %3079 = vmatpush3.bf16.xpose.msra.mxu1 %v641_v0  ;;  %3080 = vmatprep.mubr.msk.bf16.mxu1 %vm3480_vm1, %v3479_v15 }
 0x5aa   :  { %3075 = vmatmul.mubr.msk.bf16.vlgmr.msra.gmra.mrb[16].mxu0 %vm199_vm2, %v525_v1  ;;  %3090 = vmatprep.subr.bf16.mxu1 %v3479_v15 }
 0x5ab   :  { %3085 = vmatpush3.bf16.xpose.msra.mxu0 %v691_v3  ;;  %3086 = vmatprep.mubr.msk.bf16.mxu0 %vm3480_vm1, %v3479_v15 }
 0x5ac   :  { %3096 = vmatprep.subr.bf16.mxu0 %v3479_v15 }
 0x5b0   :  { %3081 = vmatmul.mubr.msk.bf16.vlgmr.msra.gmra.mrb[16].mxu1 %vm199_vm2, %v634_v63 }
 0x5b1   :  { %3091 = vmatpush3.bf16.msra.mxu1 %v755_v6  ;;  %3092 = vmatprep.mubr.msk.bf16.mxu1 %vm3480_vm1, %v3479_v15 }
 0x5b2   :  { %3087 = vmatmul.mubr.msk.bf16.vlgmr.msra.gmra.mrb[20].mxu0 %vm199_vm2, %v684_v2  ;;  %3102 = vmatprep.subr.bf16.mxu1 %v3479_v15 }
 0x5b3   :  { %3097 = vmatpush3.bf16.msra.mxu0 %v803_v7  ;;  %3098 = vmatprep.mubr.msk.bf16.mxu0 %vm3480_vm1, %v3479_v15 }
 0x5b4   :  { %3108 = vmatprep.subr.bf16.mxu0 %v3479_v15 }
 0x67b   :  { %v3752_v8 = vpop.f32.mrb[12].mxu1 }
 0x67c   :  { %v3070_v9 = vpop.f32.mrb[13].mxu1 }
 0x67d   :  { %v571_v10 = vpop.f32.mrb[14].mxu1  ;;  %v3754_v11 = vpop.f32.mrb[16].mxu0 }
 0x67e   :  { %v3071_v12 = vpop.f32.mrb[15].mxu1  ;;  %v3076_v13 = vpop.f32.mrb[17].mxu0 }
 0x67f   :  { %v619_v14 = vpop.f32.mrb[18].mxu0 }
 0x680   :  { %v3077_v16 = vpop.f32.mrb[19].mxu0 }
 0x683   :  { %v677_v17 = vpop.f32.mrb[16].mxu1 }
 0x684   :  { %v678_v18 = vadd.f32 %v3663_v47, %v677_v17  ;;  %v3082_v19 = vpop.f32.mrb[17].mxu1 }
 0x685   :  { %v680_v20 = vpop.f32.mrb[18].mxu1  ;;  %v727_v21 = vpop.f32.mrb[20].mxu0 }
 0x686   :  { %v733_v22 = vmul.f32 1.442695, %v678_v18  ;;  %v728_v23 = vadd.f32 %v3668_v49, %v727_v21  ;;  %v3083_v24 = vpop.f32.mrb[19].mxu1  ;;  %v3088_v25 = vpop.f32.mrb[21].mxu0 }
 0x687   :  { %v730_v26 = vpop.f32.mrb[22].mxu0 }
 0x688   :  { %3355 = vpow2.f32 %v733_v22  ;;  %v735_v27 = vmul.f32 1.442695, %v728_v23  ;;  %v3089_v28 = vpop.f32.mrb[23].mxu0 }
 0x689   :  { %v3315_v28 = vld [vmem:[%s4197_s6] sm:$0xff]  }
 0x68a   :  { %3357 = vpow2.f32 %v735_v27 }
 0x692   :  { %v3356_v29 = vpop.eup %3355 }
 0x693   :  { %v737_v30 = vsel %vm199_vm2, %v3356_v29, 0.0 }
 0x694   :  { %v3358_v33 = vpop.eup %3357  ;;  %738 = vadd.xlane.f32.xlu0 %v737_v30 }
 0x695   :  { %v740_v34 = vsel %vm199_vm2, %v3358_v33, 0.0 }
 0x696   :  { %741 = vadd.xlane.f32.xlu1 %v740_v34 }
 0x6a7   :  { %908 = vrot.lane.b32.xlu1 %v3642_v42, %s4223_s0 }
 0x6aa   :  { %858 = vrot.lane.b32.xlu0 %v3640_v39, %s4223_s0 }
 0x6ab   :  { %906 = vrot.lane.b32.xlu1 %v3642_v42, %s4219_s30 }
 0x6ae   :  { %856 = vrot.lane.b32.xlu0 %v3640_v39, %s4219_s30  ;;  %s4221_s30 = smov 24  }
 0x721   :  { %v739_v35 = vpop.xlane.xlu0 %738 }
 0x722   :  { %3359 = vrcp.f32 %v739_v35 }
 0x723   :  { %v742_v36 = vpop.xlane.xlu1 %741 }
 0x724   :  { %3361 = vrcp.f32 %v742_v36 }
 0x725   :  { %v859_v41 = vpop.permute.xlu0 %858 }
 0x726   :  { %v864_v46 = vsel %vm199_vm2, %v859_v41, 0 }
 0x727   :  { %v909_v45 = vpop.permute.xlu1 %908 }
 0x728   :  { %v914_v50 = vsel %vm199_vm2, %v909_v45, 0 }
 0x729   :  { %v857_v51 = vpop.permute.xlu0 %856 }
 0x72b   :  { %v907_v52 = vpop.permute.xlu1 %906 }
 0x72c   :  { %v3360_v37 = vpop.eup %3359 }
 0x72d   :  { %v745_v38 = vmul.f32 %v3360_v37, %v3356_v29  ;;  %v3316_v29 = vld [vmem:[%s4197_s6 + $0x8] sm:$0xff]  }
 0x72e   :  { %v3362_v40 = vpop.eup %3361 }
 0x72f   :  { %v746_v43 = vmul.f32 %v3362_v40, %v3358_v33  ;;  %v747_v44 = vpack.c.bf16 %v745_v38, %v745_v38 }
 0x731   :  { %3093 = vmatmul.mubr.msk.bf16.vlgmr.msra.gmra.mrb[20].mxu1 %vm199_vm2, %v747_v44  ;;  %v748_v48 = vpack.c.bf16 %v746_v43, %v746_v43 }
 0x732   :  { %3103 = vmatpush3.bf16.xpose.msra.mxu1 %v864_v46  ;;  %3104 = vmatprep.mubr.msk.bf16.mxu1 %vm3480_vm1, %v3479_v15 }
 0x733   :  { %3099 = vmatmul.mubr.msk.bf16.vlgmr.msra.gmra.mrb[24].mxu0 %vm199_vm2, %v748_v48  ;;  %3114 = vmatprep.subr.bf16.mxu1 %v3479_v15  ;;  %v2839_v48 = vld [vmem:[%s4198_s7] ss:$0 sm:$0xff] }
 0x734   :  { %3109 = vmatpush3.bf16.xpose.msra.mxu0 %v914_v50  ;;  %3110 = vmatprep.mubr.msk.bf16.mxu0 %vm3480_vm1, %v3479_v15 }
 0x735   :  { %3120 = vmatprep.subr.bf16.mxu0 %v3479_v15 }
 0x739   :  { %3105 = vmatmul.mubr.msk.bf16.vlgmr.msra.gmra.mrb[24].mxu1 %vm199_vm2, %v857_v51 }
 0x73a   :  { %3116 = vmatprep.mubr.msk.bf16.mxu1 %vm3480_vm1, %v3479_v15 }
 0x73b   :  { %3111 = vmatmul.mubr.msk.bf16.vlgmr.msra.gmra.mrb[28].mxu0 %vm199_vm2, %v907_v52 }
 0x73c   :  { %3122 = vmatprep.mubr.msk.bf16.mxu0 %vm3480_vm1, %v3479_v15 }
 0x804   :  { %v791_v53 = vpop.f32.mrb[20].mxu1 }
 0x805   :  { %v3094_v54 = vpop.f32.mrb[21].mxu1 }
 0x806   :  { %v794_v55 = vpop.f32.mrb[22].mxu1  ;;  %v839_v56 = vpop.f32.mrb[24].mxu0 }
 0x807   :  { %v3095_v57 = vpop.f32.mrb[23].mxu1  ;;  %v3100_v58 = vpop.f32.mrb[25].mxu0 }
 0x808   :  { %v842_v59 = vpop.f32.mrb[26].mxu0 }
 0x809   :  { %v3101_v60 = vpop.f32.mrb[27].mxu0 }
 0x80c   :  { %v900_v61 = vpop.f32.mrb[24].mxu1 }
 0x80d   :  { %v901_v62 = vadd.f32 %v3663_v47, %v900_v61  ;;  %v3106_v63 = vpop.f32.mrb[25].mxu1 }
 0x80e   :  { %v903_v0 = vpop.f32.mrb[26].mxu1  ;;  %v950_v1 = vpop.f32.mrb[28].mxu0 }
 0x80f   :  { %v956_v2 = vmul.f32 1.442695, %v901_v62  ;;  %v951_v3 = vadd.f32 %v3668_v49, %v950_v1  ;;  %v3107_v4 = vpop.f32.mrb[27].mxu1  ;;  %v3112_v5 = vpop.f32.mrb[29].mxu0 }
 0x810   :  { %v953_v6 = vpop.f32.mrb[30].mxu0  ;;  %v3318_v5 = vld [vmem:[%s4201_s10 + $0x8] sm:$0xff]  }
 0x811   :  { %3363 = vpow2.f32 %v956_v2  ;;  %v958_v7 = vmul.f32 1.442695, %v951_v3  ;;  %v3113_v9 = vpop.f32.mrb[31].mxu0 }
 0x813   :  { %3365 = vpow2.f32 %v958_v7 }
 0x81b   :  { %v3364_v10 = vpop.eup %3363 }
 0x81c   :  { %v960_v12 = vsel %vm199_vm2, %v3364_v10, 0.0 }
 0x81d   :  { %v3366_v13 = vpop.eup %3365  ;;  %961 = vadd.xlane.f32.xlu0 %v960_v12 }
 0x81e   :  { %v963_v14 = vsel %vm199_vm2, %v3366_v13, 0.0 }
 0x81f   :  { %964 = vadd.xlane.f32.xlu1 %v963_v14 }
 0x830   :  { %1020 = vrot.lane.b32.xlu1 %v3642_v42, %s4217_s21 }
 0x833   :  { %972 = vrot.lane.b32.xlu0 %v3640_v39, %s4217_s21  ;;  %s4242_s21 = smov 8  }
 0x834   :  { %626 = vrot.lane.b32.xlu1 %v3754_v11, %s4215_s1 }
 0x837   :  { %624 = vrot.lane.b32.xlu0 %v3752_v8, %s4215_s1  ;;  %s4243_s1 = smov 16  }
 0x838   :  { %849 = vrot.lane.b32.xlu1 %v839_v56, %s4213_s2 }
 0x83b   :  { %847 = vrot.lane.b32.xlu0 %v791_v53, %s4213_s2 }
 0x8aa   :  { %v962_v16 = vpop.xlane.xlu0 %961 }
 0x8ab   :  { %3367 = vrcp.f32 %v962_v16 }
 0x8ac   :  { %v965_v17 = vpop.xlane.xlu1 %964 }
 0x8ad   :  { %3369 = vrcp.f32 %v965_v17  ;;  %v2843_v17 = vld [vmem:[%s4199_s8] ss:$0 sm:$0xff] }
 0x8ae   :  { %v973_v42 = vpop.permute.xlu0 %972 }
 0x8af   :  { %v978_v18 = vsel %vm316_vm3, %v973_v42, 0 }
 0x8b0   :  { %3115 = vmatpush3.bf16.msra.mxu1 %v978_v18  ;;  %v1021_v39 = vpop.permute.xlu1 %1020 }
 0x8b1   :  { %v1026_v11 = vsel %vm316_vm3, %v1021_v39, 0  ;;  %3126 = vmatprep.subr.bf16.mxu1 %v3479_v15 }
 0x8b2   :  { %v625_v8 = vpop.permute.xlu0 %624  ;;  %3121 = vmatpush3.bf16.msra.mxu0 %v1026_v11  ;;  %v2844_v11 = vld [vmem:[%s4200_s9] ss:$0 sm:$0xff] }
 0x8b3   :  { %631 = vst.msk [vmem:[#allocation2] sm:$0xff] %vm630_vm4, %v625_v8  ;;  %3134 = vmatprep.subr.bf16.mxu0 %v3479_v15 }
 0x8b4   :  { %v627_v19 = vpop.permute.xlu1 %626 }
 0x8b5   :  { %v3368_v20 = vpop.eup %3367  ;;  %632 = vst.msk [vmem:[#allocation2 + $0x8] sm:$0xff] %vm630_vm4, %v627_v19 }
 0x8b6   :  { %v968_v21 = vmul.f32 %v3368_v20, %v3364_v10  ;;  %v848_v22 = vpop.permute.xlu0 %847 }
 0x8b7   :  { %v3370_v23 = vpop.eup %3369  ;;  %854 = vst.msk [vmem:[#allocation2] sm:$0xff] %vm853_vm5, %v848_v22  ;;  %v3319_v22 = vld [vmem:[%s4203_s12] sm:$0xff]  }
 0x8b8   :  { %v969_v24 = vmul.f32 %v3370_v23, %v3366_v13  ;;  %v850_v25 = vpop.permute.xlu1 %849  ;;  %v970_v26 = vpack.c.bf16 %v968_v21, %v968_v21  ;;  %v3320_v23 = vld [vmem:[%s4203_s12 + $0x8] sm:$0xff]  }
 0x8b9   :  { %855 = vst.msk [vmem:[#allocation2 + $0x8] sm:$0xff] %vm853_vm5, %v850_v25  ;;  %v3322_v25 = vld [vmem:[%s4203_s12 + $0x18] sm:$0xff]  }
 0x8ba   :  { %3117 = vmatmul.mubr.msk.bf16.vlgmr.msra.gmra.mrb[28].mxu1 %vm199_vm2, %v970_v26  ;;  %v971_v27 = vpack.c.bf16 %v969_v24, %v969_v24  ;;  %v3321_v24 = vld [vmem:[%s4203_s12 + $0x10] sm:$0xff]   ;;  %v2845_v26 = vld [vmem:[%s4202_s11] ss:$0 sm:$0xff] }
 0x8bb   :  { %3130 = vmatprep.mubr.msk.bf16.mxu1 %vm3480_vm1, %v3479_v15  ;;  %3127 = vmatpush3.bf16.msra.mxu1 %v3315_v28 }
 0x8bc   :  { %3123 = vmatmul.mubr.msk.bf16.vlgmr.msra.gmra.mrb[32].mxu0 %vm199_vm2, %v971_v27  ;;  %3128 = vmatprep.subr.bf16.mxu1 %v3479_v15 }
 0x8bd   :  { %3138 = vmatprep.mubr.msk.bf16.mxu0 %vm3480_vm1, %v3479_v15 }
 0x8bf   :  { %3129 = vmatpush3.bf16.msra.mxu1 %v3316_v29 }
 0x8c0   :  { %3142 = vmatprep.subr.bf16.mxu1 %v3479_v15 }
 0x98d   :  { %v1014_v30 = vpop.f32.mrb[28].mxu1 }
 0x98e   :  { %1070 = vrot.lane.b32.xlu0 %v1014_v30, %s4221_s30  ;;  %v3118_v33 = vpop.f32.mrb[29].mxu1 }
 0x98f   :  { %v1017_v34 = vpop.f32.mrb[30].mxu1  ;;  %v1062_v35 = vpop.f32.mrb[32].mxu0 }
 0x990   :  { %v3119_v36 = vpop.f32.mrb[31].mxu1  ;;  %1072 = vrot.lane.b32.xlu1 %v1062_v35, %s4221_s30  ;;  %v3124_v37 = vpop.f32.mrb[33].mxu0 }
 0x991   :  { %v1065_v38 = vpop.f32.mrb[34].mxu0 }
 0x992   :  { %v3125_v40 = vpop.f32.mrb[35].mxu0 }
 0xa00   :  { %v1071_v41 = vpop.permute.xlu0 %1070 }
 0xa01   :  { %1077 = vst.msk [vmem:[#allocation2] sm:$0xff] %vm1076_vm6, %v1071_v41 }
 0xa02   :  { %v1073_v43 = vpop.permute.xlu1 %1072 }
 0xa03   :  { %1078 = vst.msk [vmem:[#allocation2 + $0x8] sm:$0xff] %vm1076_vm6, %v1073_v43 }
 0xa08   :  { %v1079_v44 = vld [vmem:[#allocation2] sm:$0xff] }
 0xa0a   :  { %v1080_v45 = vld [vmem:[#allocation2 + $0x8] sm:$0xff] }
 0xa0b   :  { %v1081_v46 = vpack.c.bf16 %v1080_v45, %v1079_v44 }
 0xa0d   :  { %3131 = vmatmul.mubr.msk.bf16.vlgmr.msra.gmra.mrb[32].mxu1 %vm70_vm0, %v1081_v46 }
 0xa0e   :  { %3150 = vmatprep.mubr.msk.bf16.mxu1 %vm3480_vm1, %v3479_v15  ;;  %3143 = vmatpush3.bf16.msra.mxu1 %v3319_v22 }
 0xa0f   :  { %3144 = vmatprep.subr.bf16.mxu1 %v3479_v15 }
 0xa12   :  { %3145 = vmatpush3.bf16.msra.mxu1 %v3320_v23 }
 0xa13   :  { %3146 = vmatprep.subr.bf16.mxu1 %v3479_v15 }
 0xa16   :  { %3147 = vmatpush3.bf16.msra.mxu1 %v3321_v24 }
 0xa17   :  { %3148 = vmatprep.subr.bf16.mxu1 %v3479_v15 }
 0xa1a   :  { %3149 = vmatpush3.bf16.msra.mxu1 %v3322_v25 }
 0xa1b   :  { %3168 = vmatprep.subr.bf16.mxu1 %v3479_v15 }
 0xae0   :  { %v1142_v50 = vpop.f32.mrb[32].mxu1 }
 0xae1   :  { %v1143_v51 = vadd.f32 %v2839_v48, %v1142_v50  ;;  %v3132_v52 = vpop.f32.mrb[33].mxu1 }
 0xae2   :  { %v1145_v53 = vpop.f32.mrb[34].mxu1 }
 0xae3   :  { %v1146_v54 = vadd.f32 %v2839_v48, %v1145_v53  ;;  %v3133_v55 = vpop.f32.mrb[35].mxu1  ;;  %v1149_v56 = vadd.f32 %v1143_v51, %v3628_v31 }
 0xae5   :  { %v1153_v57 = vsel %vm70_vm0, %v1149_v56, 0.0  ;;  %v1150_v58 = vadd.f32 %v1146_v54, %v3630_v32  ;;  %v3317_v32 = vld [vmem:[%s4201_s10] sm:$0xff]  }
 0xae6   :  { %1154 = vadd.xlane.f32.xlu0 %v1153_v57  ;;  %3135 = vmatpush3.bf16.msra.mxu0 %v3317_v32 }
 0xae7   :  { %v1156_v59 = vsel %vm70_vm0, %v1150_v58, 0.0  ;;  %3136 = vmatprep.subr.bf16.mxu0 %v3479_v15 }
 0xae8   :  { %1157 = vadd.xlane.f32.xlu1 %v1156_v59 }
 0xaea   :  { %3137 = vmatpush3.bf16.msra.mxu0 %v3318_v5 }
 0xaeb   :  { %3154 = vmatprep.subr.bf16.mxu0 %v3479_v15 }
 0xb73   :  { %v1155_v60 = vpop.xlane.xlu0 %1154 }
 0xb74   :  { %v1159_v61 = vmul.f32 0.03125, %v1155_v60 }
 0xb75   :  { %v1158_v62 = vpop.xlane.xlu1 %1157 }
 0xb76   :  { %v1161_v63 = vsub.f32 %v1149_v56, %v1159_v61  ;;  %v1160_v0 = vmul.f32 0.03125, %v1158_v62 }
 0xb78   :  { %v1162_v1 = vsub.f32 %v1150_v58, %v1160_v0  ;;  %v1163_v2 = vmul.f32 %v1161_v63, %v1161_v63  ;;  %v2849_v58 = vld [vmem:[%s4204_s13] ss:$0 sm:$0xff] }
 0xb7a   :  { %v1165_v3 = vsel %vm70_vm0, %v1163_v2, 0.0  ;;  %v1164_v4 = vmul.f32 %v1162_v1, %v1162_v1 }
 0xb7b   :  { %1166 = vadd.xlane.f32.xlu0 %v1165_v3 }
 0xb7c   :  { %v1168_v31 = vsel %vm70_vm0, %v1164_v4, 0.0 }
 0xb7f   :  { %1169 = vadd.xlane.f32.xlu0 %v1168_v31 }
 0xc08   :  { %v1167_v6 = vpop.xlane.xlu0 %1166 }
 0xc09   :  { %v1171_v7 = vmul.f32 0.03125, %v1167_v6 }
 0xc0b   :  { %v1173_v9 = vadd.f32 1e-12, %v1171_v7 }
 0xc0c   :  { %v1170_v10 = vpop.xlane.xlu0 %1169 }
 0xc0d   :  { %3371 = vrsqrt.f32 %v1173_v9  ;;  %v1172_v12 = vmul.f32 0.03125, %v1170_v10 }
 0xc0f   :  { %v1174_v13 = vadd.f32 1e-12, %v1172_v12 }
 0xc11   :  { %3373 = vrsqrt.f32 %v1174_v13 }
 0xc17   :  { %v3372_v14 = vpop.eup %3371 }
 0xc18   :  { %v1177_v16 = vmul.f32 %v3372_v14, %v1161_v63 }
 0xc1a   :  { %v1185_v18 = vmul.f32 %v2843_v17, %v1177_v16  ;;  %v3323_v16 = vld [vmem:[%s4195_s4 + $0x10] sm:$0xff]  }
 0xc1b   :  { %v3374_v42 = vpop.eup %3373 }
 0xc1c   :  { %v1178_v39 = vmul.f32 %v3374_v42, %v1162_v1  ;;  %v1193_v19 = vadd.f32 %v2844_v11, %v1185_v18 }
 0xc1e   :  { %v1186_v8 = vmul.f32 %v2843_v17, %v1178_v39  ;;  %v3324_v17 = vld [vmem:[%s4195_s4 + $0x18] sm:$0xff]  }
 0xc20   :  { %v1194_v20 = vadd.f32 %v2844_v11, %v1186_v8 }
 0xc22   :  { %v1195_v21 = vpack.c.bf16 %v1194_v20, %v1193_v19 }
 0xc24   :  { %3139 = vmatmul.mubr.msk.bf16.vlgmr.msra.gmra.mrb[36].mxu0 %vm70_vm0, %v1195_v21  ;;  %v2855_v21 = vld [vmem:[%s4205_s14] ss:$0 sm:$0xff] }
 0xc25   :  { %3158 = vmatprep.mubr.msk.bf16.mxu0 %vm3480_vm1, %v3479_v15  ;;  %3155 = vmatpush3.bf16.msra.mxu0 %v3323_v16 }
 0xc26   :  { %3156 = vmatprep.subr.bf16.mxu0 %v3479_v15 }
 0xc29   :  { %3157 = vmatpush3.bf16.msra.mxu0 %v3324_v17 }
 0xc2a   :  { %3162 = vmatprep.subr.bf16.mxu0 %v3479_v15 }
 0xcf7   :  { %v1256_v27 = vpop.f32.mrb[36].mxu0 }
 0xcf8   :  { %v1257_v28 = vadd.f32 %v2845_v26, %v1256_v27  ;;  %v3140_v29 = vpop.f32.mrb[37].mxu0 }
 0xcf9   :  { %v1259_v30 = vpop.f32.mrb[38].mxu0 }
 0xcfa   :  { %v1265_v33 = vmul.f32 0.044715, %v1257_v28  ;;  %v1260_v34 = vadd.f32 %v2845_v26, %v1259_v30  ;;  %v3141_v35 = vpop.f32.mrb[39].mxu0  ;;  %v1263_v52 = vmul.f32 0.5, %v1257_v28  ;;  %v2856_v26 = vld [vmem:[%s4206_s15] ss:$0 sm:$0xff] }
 0xcfc   :  { %v1267_v36 = vmul.f32 %v1265_v33, %v1257_v28  ;;  %v1266_v37 = vmul.f32 0.044715, %v1260_v34  ;;  %v1264_v53 = vmul.f32 0.5, %v1260_v34  ;;  %v2862_v33 = vld [vmem:[%s4196_s5 + $0x1] ss:$0 sm:$0xff] }
 0xcfe   :  { %v1269_v38 = vmul.f32 %v1267_v36, %v1257_v28  ;;  %v1268_v40 = vmul.f32 %v1266_v37, %v1260_v34 }
 0xd00   :  { %v1271_v41 = vadd.f32 %v1269_v38, %v1257_v28  ;;  %v1270_v43 = vmul.f32 %v1268_v40, %v1260_v34 }
 0xd02   :  { %v1273_v44 = vmul.f32 0.7978846, %v1271_v41  ;;  %v1272_v45 = vadd.f32 %v1270_v43, %v1260_v34 }
 0xd04   :  { %3375 = vtanh.f32 %v1273_v44  ;;  %v1274_v46 = vmul.f32 0.7978846, %v1272_v45 }
 0xd06   :  { %3377 = vtanh.f32 %v1274_v46 }
 0xd0e   :  { %v3376_v48 = vpop.eup %3375 }
 0xd0f   :  { %v1277_v50 = vadd.f32 1.0, %v3376_v48 }
 0xd10   :  { %v3378_v51 = vpop.eup %3377 }
 0xd11   :  { %v1278_v54 = vadd.f32 1.0, %v3378_v51  ;;  %v1279_v55 = vmul.f32 %v1277_v50, %v1263_v52 }
 0xd13   :  { %v1280_v56 = vmul.f32 %v1278_v54, %v1264_v53 }
 0xd15   :  { %v1281_v57 = vpack.c.bf16 %v1280_v56, %v1279_v55 }
 0xd17   :  { %3151 = vmatmul.mubr.msk.bf16.vlgmr.msra.gmra.mrb[36].mxu1 %vm1321_vm7, %v1281_v57 }
 0xd18   :  { %3170 = vmatprep.mubr.msk.bf16.mxu1 %vm3480_vm1, %v3479_v15 }
 0xdea   :  { %v1359_v59 = vpop.f32.mrb[36].mxu1 }
 0xdeb   :  { %v1360_v60 = vadd.f32 %v2849_v58, %v1359_v59  ;;  %v3152_v61 = vpop.f32.mrb[37].mxu1 }
 0xdec   :  { %v1362_v62 = vpop.f32.mrb[38].mxu1 }
 0xded   :  { %v1363_v63 = vadd.f32 %v2849_v58, %v1362_v62  ;;  %v3153_v0 = vpop.f32.mrb[39].mxu1  ;;  %v1366_v1 = vadd.f32 %v1360_v60, %v1193_v19 }
 0xdef   :  { %v1370_v2 = vsel %vm70_vm0, %v1366_v1, 0.0  ;;  %v1367_v3 = vadd.f32 %v1363_v63, %v1194_v20 }
 0xdf0   :  { %1371 = vadd.xlane.f32.xlu0 %v1370_v2 }
 0xdf1   :  { %v1373_v4 = vsel %vm70_vm0, %v1367_v3, 0.0 }
 0xdf2   :  { %1374 = vadd.xlane.f32.xlu1 %v1373_v4 }
 0xe7d   :  { %v1372_v31 = vpop.xlane.xlu0 %1371 }
 0xe7e   :  { %v1376_v32 = vmul.f32 0.03125, %v1372_v31 }
 0xe7f   :  { %v1375_v5 = vpop.xlane.xlu1 %1374 }
 0xe80   :  { %v1378_v6 = vsub.f32 %v1366_v1, %v1376_v32  ;;  %v1377_v7 = vmul.f32 0.03125, %v1375_v5 }
 0xe82   :  { %v1379_v9 = vsub.f32 %v1367_v3, %v1377_v7  ;;  %v1380_v10 = vmul.f32 %v1378_v6, %v1378_v6 }
 0xe84   :  { %v1382_v12 = vsel %vm70_vm0, %v1380_v10, 0.0  ;;  %v1381_v13 = vmul.f32 %v1379_v9, %v1379_v9 }
 0xe85   :  { %1383 = vadd.xlane.f32.xlu0 %v1382_v12 }
 0xe86   :  { %v1385_v14 = vsel %vm70_vm0, %v1381_v13, 0.0 }
 0xe87   :  { %1386 = vadd.xlane.f32.xlu1 %v1385_v14 }
 0xf12   :  { %v1384_v42 = vpop.xlane.xlu0 %1383 }
 0xf13   :  { %v1388_v18 = vmul.f32 0.03125, %v1384_v42 }
 0xf14   :  { %v1387_v39 = vpop.xlane.xlu1 %1386 }
 0xf15   :  { %v1390_v11 = vadd.f32 1e-12, %v1388_v18  ;;  %v1389_v8 = vmul.f32 0.03125, %v1387_v39 }
 0xf17   :  { %3379 = vrsqrt.f32 %v1390_v11  ;;  %v1391_v19 = vadd.f32 1e-12, %v1389_v8 }
 0xf19   :  { %3381 = vrsqrt.f32 %v1391_v19 }
 0xf21   :  { %v3380_v20 = vpop.eup %3379 }
 0xf22   :  { %v1394_v22 = vmul.f32 %v3380_v20, %v1378_v6 }
 0xf23   :  { %v3382_v23 = vpop.eup %3381 }
 0xf24   :  { %v1402_v24 = vmul.f32 %v2855_v21, %v1394_v22  ;;  %v1395_v25 = vmul.f32 %v3382_v23, %v1379_v9 }
 0xf26   :  { %v1403_v27 = vmul.f32 %v2855_v21, %v1395_v25  ;;  %v3896_v28 = vadd.f32 %v2856_v26, %v1402_v24 }
 0xf28   :  { %v3898_v29 = vadd.f32 %v2856_v26, %v1403_v27 }
 0xf2a   :  { %v1412_v30 = vpack.c.bf16 %v3898_v29, %v3896_v28 }
 0xf2c   :  { %3159 = vmatmul.mubr.msk.bf16.vlgmr.msra.gmra.mrb[40].mxu0 %vm70_vm0, %v1412_v30  ;;  %v3977_v30 = vld [vmem:[%s4236_s22] ss:$0 sm:$0xff] }
 0xf2d   :  { %3164 = vmatprep.mubr.msk.bf16.mxu0 %vm3480_vm1, %v3479_v15 }
 0xfff   :  { %v1475_v34 = vpop.f32.mrb[40].mxu0 }
0x1000   :  { %v1476_v35 = vadd.f32 %v2862_v33, %v1475_v34  ;;  %v3160_v36 = vpop.f32.mrb[41].mxu0 }
0x1001   :  { %v1478_v37 = vpop.f32.mrb[42].mxu0 }
0x1002   :  { %v3908_v38 = vpack.c.bf16 %v1476_v35, %v1476_v35  ;;  %v1479_v40 = vadd.f32 %v2862_v33, %v1478_v37  ;;  %v3161_v41 = vpop.f32.mrb[43].mxu0 }
0x1004   :  { %v3910_v43 = vpack.c.bf16 %v1479_v40, %v1479_v40  ;;  %1485 = vrot.lane.b32.xlu0 %v3908_v38, %s3481_s20  ;;  %v3983_v40 = vld [vmem:[%s4236_s22 + $0x1] ss:$0 sm:$0xff]  ;;  %s4237_s22 = smov 112  }
0x1006   :  { %1534 = vrot.lane.b32.xlu1 %v3910_v43, %s3481_s20 }
0x1076   :  { %v1486_v44 = vpop.permute.xlu0 %1485 }
0x1077   :  { %v1491_v45 = vsel %vm199_vm2, %v1486_v44, 0 }
0x1078   :  { %3163 = vmatpush3.bf16.xpose.msra.mxu0 %v1491_v45  ;;  %v1535_v46 = vpop.permute.xlu1 %1534 }
0x1079   :  { %v1540_v48 = vsel %vm199_vm2, %v1535_v46, 0  ;;  %3174 = vmatprep.subr.bf16.mxu0 %v3479_v15 }
0x107a   :  { %3169 = vmatpush3.bf16.xpose.msra.mxu1 %v1540_v48 }
0x107b   :  { %3180 = vmatprep.subr.bf16.mxu1 %v3479_v15 }
0x107f   :  { %3165 = vmatmul.mubr.msk.bf16.vlgmr.msra.gmra.mrb[44].mxu0 %vm199_vm2, %v3908_v38 }
0x1080   :  { %3176 = vmatprep.mubr.msk.bf16.mxu0 %vm3480_vm1, %v3479_v15 }
0x1081   :  { %3171 = vmatmul.mubr.msk.bf16.vlgmr.msra.gmra.mrb[40].mxu1 %vm199_vm2, %v3910_v43 }
0x1082   :  { %3182 = vmatprep.mubr.msk.bf16.mxu1 %vm3480_vm1, %v3479_v15 }
0x1152   :  { %v1527_v50 = vpop.f32.mrb[44].mxu0 }
0x1153   :  { %v1528_v51 = vadd.f32 %v3663_v47, %v1527_v50  ;;  %v3166_v52 = vpop.f32.mrb[45].mxu0 }
0x1154   :  { %v1530_v53 = vpop.f32.mrb[46].mxu0  ;;  %v1576_v54 = vpop.f32.mrb[40].mxu1 }
0x1155   :  { %v1582_v55 = vmul.f32 1.442695, %v1528_v51  ;;  %v1577_v56 = vadd.f32 %v3668_v49, %v1576_v54  ;;  %v3167_v57 = vpop.f32.mrb[47].mxu0  ;;  %v3172_v58 = vpop.f32.mrb[41].mxu1 }
0x1156   :  { %v1579_v59 = vpop.f32.mrb[42].mxu1 }
0x1157   :  { %3383 = vpow2.f32 %v1582_v55  ;;  %v1584_v60 = vmul.f32 1.442695, %v1577_v56  ;;  %v3173_v61 = vpop.f32.mrb[43].mxu1 }
0x1159   :  { %3385 = vpow2.f32 %v1584_v60 }
0x1161   :  { %v3384_v62 = vpop.eup %3383 }
0x1162   :  { %v1586_v63 = vsel %vm199_vm2, %v3384_v62, 0.0 }
0x1163   :  { %v3386_v0 = vpop.eup %3385  ;;  %1587 = vadd.xlane.f32.xlu1 %v1586_v63 }
0x1164   :  { %v1589_v47 = vsel %vm199_vm2, %v3386_v0, 0.0 }
0x1165   :  { %1590 = vadd.xlane.f32.xlu0 %v1589_v47 }
0x1174   :  { %1646 = vrot.lane.b32.xlu1 %v3910_v43, %s3482_s24 }
0x1178   :  { %1698 = vrot.lane.b32.xlu1 %v3908_v38, %s3483_s25 }
0x117b   :  { %1598 = vrot.lane.b32.xlu0 %v3908_v38, %s3482_s24 }
0x117c   :  { %1748 = vrot.lane.b32.xlu1 %v3910_v43, %s3483_s25 }
0x117f   :  { %1696 = vrot.lane.b32.xlu0 %v3908_v38, %s3484_s3 }
0x1180   :  { %1746 = vrot.lane.b32.xlu1 %v3910_v43, %s3484_s3  ;;  %s4238_s3 = smov 48  }
0x1183   :  { %1812 = vrot.lane.b32.xlu0 %v3908_v38, %s3485_s26 }
0x1184   :  { %1860 = vrot.lane.b32.xlu1 %v3910_v43, %s3485_s26  ;;  %s4239_s26 = smov 72  }
0x11f0   :  { %v1588_v49 = vpop.xlane.xlu1 %1587 }
0x11f1   :  { %3387 = vrcp.f32 %v1588_v49 }
0x11f2   :  { %v1591_v1 = vpop.xlane.xlu0 %1590 }
0x11f3   :  { %3389 = vrcp.f32 %v1591_v1 }
0x11f4   :  { %v1647_v2 = vpop.permute.xlu1 %1646 }
0x11f5   :  { %v1652_v3 = vsel %vm316_vm3, %v1647_v2, 0 }
0x11f6   :  { %v1599_v4 = vpop.permute.xlu0 %1598  ;;  %3181 = vmatpush3.bf16.msra.mxu1 %v1652_v3 }
0x11f7   :  { %v1604_v31 = vsel %vm316_vm3, %v1599_v4, 0  ;;  %3192 = vmatprep.subr.bf16.mxu1 %v3479_v15 }
0x11f8   :  { %3175 = vmatpush3.bf16.msra.mxu0 %v1604_v31  ;;  %v1699_v32 = vpop.permute.xlu1 %1698 }
0x11f9   :  { %3186 = vmatprep.subr.bf16.mxu0 %v3479_v15  ;;  %v1704_v14 = vsel %vm199_vm2, %v1699_v32, 0 }
0x11fa   :  { %v1697_v13 = vpop.permute.xlu0 %1696 }
0x11fb   :  { %v3388_v5 = vpop.eup %3387 }
0x11fc   :  { %v1594_v6 = vmul.f32 %v3388_v5, %v3384_v62  ;;  %v1749_v7 = vpop.permute.xlu1 %1748 }
0x11fd   :  { %v3390_v9 = vpop.eup %3389  ;;  %v1754_v42 = vsel %vm199_vm2, %v1749_v7, 0 }
0x11fe   :  { %v1595_v10 = vmul.f32 %v3390_v9, %v3386_v0  ;;  %v1596_v12 = vpack.c.bf16 %v1594_v6, %v1594_v6  ;;  %v1813_v18 = vpop.permute.xlu0 %1812 }
0x11ff   :  { %v1818_v11 = vsel %vm316_vm3, %v1813_v18, 0 }
0x1200   :  { %3177 = vmatmul.mubr.msk.bf16.vlgmr.msra.gmra.mrb[48].mxu0 %vm199_vm2, %v1596_v12  ;;  %v1597_v16 = vpack.c.bf16 %v1595_v10, %v1595_v10  ;;  %v1747_v17 = vpop.permute.xlu1 %1746 }
0x1201   :  { %3187 = vmatpush3.bf16.xpose.msra.mxu0 %v1704_v14  ;;  %3188 = vmatprep.mubr.msk.bf16.mxu0 %vm3480_vm1, %v3479_v15 }
0x1202   :  { %3183 = vmatmul.mubr.msk.bf16.vlgmr.msra.gmra.mrb[44].mxu1 %vm199_vm2, %v1597_v16  ;;  %3198 = vmatprep.subr.bf16.mxu0 %v3479_v15 }
0x1203   :  { %3193 = vmatpush3.bf16.xpose.msra.mxu1 %v1754_v42  ;;  %3194 = vmatprep.mubr.msk.bf16.mxu1 %vm3480_vm1, %v3479_v15 }
0x1204   :  { %3204 = vmatprep.subr.bf16.mxu1 %v3479_v15  ;;  %v1861_v39 = vpop.permute.xlu1 %1860 }
0x1205   :  { %v1866_v8 = vsel %vm316_vm3, %v1861_v39, 0 }
0x1208   :  { %3189 = vmatmul.mubr.msk.bf16.vlgmr.msra.gmra.mrb[52].mxu0 %vm199_vm2, %v1697_v13 }
0x1209   :  { %3199 = vmatpush3.bf16.msra.mxu0 %v1818_v11  ;;  %3200 = vmatprep.mubr.msk.bf16.mxu0 %vm3480_vm1, %v3479_v15 }
0x120a   :  { %3195 = vmatmul.mubr.msk.bf16.vlgmr.msra.gmra.mrb[48].mxu1 %vm199_vm2, %v1747_v17  ;;  %3210 = vmatprep.subr.bf16.mxu0 %v3479_v15 }
0x120b   :  { %3205 = vmatpush3.bf16.msra.mxu1 %v1866_v8  ;;  %3206 = vmatprep.mubr.msk.bf16.mxu1 %vm3480_vm1, %v3479_v15 }
0x120c   :  { %3216 = vmatprep.subr.bf16.mxu1 %v3479_v15 }
0x12d3   :  { %v1640_v19 = vpop.f32.mrb[48].mxu0 }
0x12d4   :  { %1694 = vst.msk [vmem:[#allocation2] sm:$0xff] %vm199_vm2, %v1640_v19  ;;  %v3178_v20 = vpop.f32.mrb[49].mxu0 }
0x12d5   :  { %v1643_v21 = vpop.f32.mrb[50].mxu0  ;;  %v1688_v22 = vpop.f32.mrb[44].mxu1 }
0x12d6   :  { %1695 = vst.msk [vmem:[#allocation2 + $0x8] sm:$0xff] %vm199_vm2, %v1688_v22  ;;  %v3179_v23 = vpop.f32.mrb[51].mxu0  ;;  %v3184_v24 = vpop.f32.mrb[45].mxu1 }
0x12d7   :  { %v1691_v25 = vpop.f32.mrb[46].mxu1 }
0x12d8   :  { %v3185_v26 = vpop.f32.mrb[47].mxu1 }
0x12db   :  { %v1740_v27 = vpop.f32.mrb[52].mxu0 }
0x12dc   :  { %v1741_v33 = vadd.f32 %v3977_v30, %v1740_v27  ;;  %v3190_v34 = vpop.f32.mrb[53].mxu0 }
0x12dd   :  { %v1743_v35 = vpop.f32.mrb[54].mxu0  ;;  %v1790_v36 = vpop.f32.mrb[48].mxu1 }
0x12de   :  { %v1796_v37 = vmul.f32 1.442695, %v1741_v33  ;;  %v1791_v41 = vadd.f32 %v3983_v40, %v1790_v36  ;;  %v3191_v44 = vpop.f32.mrb[55].mxu0  ;;  %v3196_v45 = vpop.f32.mrb[49].mxu1 }
0x12df   :  { %v1793_v46 = vpop.f32.mrb[50].mxu1 }
0x12e0   :  { %3391 = vpow2.f32 %v1796_v37  ;;  %v1798_v48 = vmul.f32 1.442695, %v1791_v41  ;;  %v3197_v50 = vpop.f32.mrb[51].mxu1 }
0x12e2   :  { %3393 = vpow2.f32 %v1798_v48 }
0x12ea   :  { %v3392_v51 = vpop.eup %3391 }
0x12eb   :  { %v1800_v52 = vsel %vm199_vm2, %v3392_v51, 0.0 }
0x12ec   :  { %v3394_v53 = vpop.eup %3393  ;;  %1801 = vadd.xlane.f32.xlu0 %v1800_v52 }
0x12ed   :  { %v1803_v54 = vsel %vm199_vm2, %v3394_v53, 0.0 }
0x12ee   :  { %1804 = vadd.xlane.f32.xlu1 %v1803_v54 }
0x12ff   :  { %1970 = vrot.lane.b32.xlu1 %v3910_v43, %s3486_s27 }
0x1302   :  { %1920 = vrot.lane.b32.xlu0 %v3908_v38, %s3486_s27  ;;  %s4240_s27 = smov 104  }
0x1303   :  { %1968 = vrot.lane.b32.xlu1 %v3910_v43, %s4237_s22 }
0x1306   :  { %1918 = vrot.lane.b32.xlu0 %v3908_v38, %s4237_s22 }
0x1307   :  { %2082 = vrot.lane.b32.xlu1 %v3910_v43, %s4238_s3 }
0x130a   :  { %2034 = vrot.lane.b32.xlu0 %v3908_v38, %s4238_s3 }
0x1379   :  { %v1802_v55 = vpop.xlane.xlu0 %1801 }
0x137a   :  { %3395 = vrcp.f32 %v1802_v55 }
0x137b   :  { %v1805_v56 = vpop.xlane.xlu1 %1804 }
0x137c   :  { %3397 = vrcp.f32 %v1805_v56 }
0x137d   :  { %v1921_v57 = vpop.permute.xlu0 %1920 }
0x137e   :  { %v1926_v47 = vsel %vm199_vm2, %v1921_v57, 0 }
0x137f   :  { %v1971_v59 = vpop.permute.xlu1 %1970 }
0x1380   :  { %v1976_v2 = vsel %vm199_vm2, %v1971_v59, 0 }
0x1381   :  { %v1919_v0 = vpop.permute.xlu0 %1918 }
0x1383   :  { %v1969_v1 = vpop.permute.xlu1 %1968 }
0x1384   :  { %v3396_v58 = vpop.eup %3395 }
0x1385   :  { %v1808_v60 = vmul.f32 %v3396_v58, %v3392_v51  ;;  %v2035_v3 = vpop.permute.xlu0 %2034 }
0x1386   :  { %v3398_v61 = vpop.eup %3397  ;;  %v2040_v31 = vsel %vm316_vm3, %v2035_v3, 0 }
0x1387   :  { %v1809_v62 = vmul.f32 %v3398_v61, %v3394_v53  ;;  %v1810_v63 = vpack.c.bf16 %v1808_v60, %v1808_v60  ;;  %v2083_v4 = vpop.permute.xlu1 %2082 }
0x1388   :  { %v2088_v32 = vsel %vm316_vm3, %v2083_v4, 0 }
0x1389   :  { %3201 = vmatmul.mubr.msk.bf16.vlgmr.msra.gmra.mrb[56].mxu0 %vm199_vm2, %v1810_v63  ;;  %v1811_v49 = vpack.c.bf16 %v1809_v62, %v1809_v62 }
0x138a   :  { %3211 = vmatpush3.bf16.xpose.msra.mxu0 %v1926_v47  ;;  %3212 = vmatprep.mubr.msk.bf16.mxu0 %vm3480_vm1, %v3479_v15 }
0x138b   :  { %3207 = vmatmul.mubr.msk.bf16.vlgmr.msra.gmra.mrb[52].mxu1 %vm199_vm2, %v1811_v49  ;;  %3222 = vmatprep.subr.bf16.mxu0 %v3479_v15 }
0x138c   :  { %3217 = vmatpush3.bf16.xpose.msra.mxu1 %v1976_v2  ;;  %3218 = vmatprep.mubr.msk.bf16.mxu1 %vm3480_vm1, %v3479_v15 }
0x138d   :  { %3228 = vmatprep.subr.bf16.mxu1 %v3479_v15 }
0x1391   :  { %3213 = vmatmul.mubr.msk.bf16.vlgmr.msra.gmra.mrb[60].mxu0 %vm199_vm2, %v1919_v0 }
0x1392   :  { %3223 = vmatpush3.bf16.msra.mxu0 %v2040_v31  ;;  %3224 = vmatprep.mubr.msk.bf16.mxu0 %vm3480_vm1, %v3479_v15 }
0x1393   :  { %3219 = vmatmul.mubr.msk.bf16.vlgmr.msra.gmra.mrb[56].mxu1 %vm199_vm2, %v1969_v1  ;;  %3234 = vmatprep.subr.bf16.mxu0 %v3479_v15 }
0x1394   :  { %3229 = vmatpush3.bf16.msra.mxu1 %v2088_v32  ;;  %3230 = vmatprep.mubr.msk.bf16.mxu1 %vm3480_vm1, %v3479_v15 }
0x1395   :  { %3240 = vmatprep.subr.bf16.mxu1 %v3479_v15 }
0x145c   :  { %v4020_v5 = vpop.f32.mrb[56].mxu0 }
0x145d   :  { %v3202_v6 = vpop.f32.mrb[57].mxu0 }
0x145e   :  { %v1857_v7 = vpop.f32.mrb[58].mxu0  ;;  %v4022_v9 = vpop.f32.mrb[52].mxu1 }
0x145f   :  { %v3203_v10 = vpop.f32.mrb[59].mxu0  ;;  %v3208_v12 = vpop.f32.mrb[53].mxu1 }
0x1460   :  { %v1905_v13 = vpop.f32.mrb[54].mxu1 }
0x1461   :  { %v3209_v14 = vpop.f32.mrb[55].mxu1 }
0x1464   :  { %v1962_v16 = vpop.f32.mrb[60].mxu0 }
0x1465   :  { %v1963_v17 = vadd.f32 %v3977_v30, %v1962_v16  ;;  %v3214_v42 = vpop.f32.mrb[61].mxu0 }
0x1466   :  { %v1965_v18 = vpop.f32.mrb[62].mxu0  ;;  %v2012_v39 = vpop.f32.mrb[56].mxu1 }
0x1467   :  { %v2018_v11 = vmul.f32 1.442695, %v1963_v17  ;;  %v2013_v8 = vadd.f32 %v3983_v40, %v2012_v39  ;;  %v3215_v19 = vpop.f32.mrb[63].mxu0  ;;  %v3220_v20 = vpop.f32.mrb[57].mxu1 }
0x1468   :  { %v2015_v21 = vpop.f32.mrb[58].mxu1 }
0x1469   :  { %3399 = vpow2.f32 %v2018_v11  ;;  %v2020_v22 = vmul.f32 1.442695, %v2013_v8  ;;  %v3221_v23 = vpop.f32.mrb[59].mxu1  ;;  %v3325_v21 = vld [vmem:[%s4197_s6 + $0x10] sm:$0xff]  }
0x146b   :  { %3401 = vpow2.f32 %v2020_v22  ;;  %v3326_v22 = vld [vmem:[%s4197_s6 + $0x18] sm:$0xff]  }
0x1473   :  { %v3400_v24 = vpop.eup %3399 }
0x1474   :  { %v2022_v25 = vsel %vm199_vm2, %v3400_v24, 0.0 }
0x1475   :  { %v3402_v26 = vpop.eup %3401  ;;  %2023 = vadd.xlane.f32.xlu0 %v2022_v25 }
0x1476   :  { %v2025_v27 = vsel %vm199_vm2, %v3402_v26, 0.0 }
0x1477   :  { %2026 = vadd.xlane.f32.xlu1 %v2025_v27 }
0x1488   :  { %2192 = vrot.lane.b32.xlu1 %v3910_v43, %s4239_s26 }
0x148b   :  { %2142 = vrot.lane.b32.xlu0 %v3908_v38, %s4239_s26 }
0x148c   :  { %2190 = vrot.lane.b32.xlu1 %v3910_v43, %s4240_s27 }
0x148f   :  { %2140 = vrot.lane.b32.xlu0 %v3908_v38, %s4240_s27 }
0x1502   :  { %v2024_v33 = vpop.xlane.xlu0 %2023 }
0x1503   :  { %3403 = vrcp.f32 %v2024_v33 }
0x1504   :  { %v2027_v34 = vpop.xlane.xlu1 %2026 }
0x1505   :  { %3405 = vrcp.f32 %v2027_v34 }
0x1506   :  { %v2143_v41 = vpop.permute.xlu0 %2142 }
0x1507   :  { %v2148_v48 = vsel %vm199_vm2, %v2143_v41, 0 }
0x1508   :  { %v2193_v46 = vpop.permute.xlu1 %2192 }
0x1509   :  { %v2198_v51 = vsel %vm199_vm2, %v2193_v46, 0  ;;  %v2887_v46 = vld [vmem:[%s4198_s7 + $0x1] ss:$0 sm:$0xff] }
0x150a   :  { %v2141_v52 = vpop.permute.xlu0 %2140 }
0x150c   :  { %v2191_v53 = vpop.permute.xlu1 %2190 }
0x150d   :  { %v3404_v35 = vpop.eup %3403 }
0x150e   :  { %v2030_v36 = vmul.f32 %v3404_v35, %v3400_v24 }
0x150f   :  { %v3406_v37 = vpop.eup %3405 }
0x1510   :  { %v2031_v44 = vmul.f32 %v3406_v37, %v3402_v26  ;;  %v2032_v45 = vpack.c.bf16 %v2030_v36, %v2030_v36 }
0x1512   :  { %3225 = vmatmul.mubr.msk.bf16.vlgmr.msra.gmra.mrb[64].mxu0 %vm199_vm2, %v2032_v45  ;;  %v2033_v50 = vpack.c.bf16 %v2031_v44, %v2031_v44 }
0x1513   :  { %3235 = vmatpush3.bf16.xpose.msra.mxu0 %v2148_v48  ;;  %3236 = vmatprep.mubr.msk.bf16.mxu0 %vm3480_vm1, %v3479_v15 }
0x1514   :  { %3231 = vmatmul.mubr.msk.bf16.vlgmr.msra.gmra.mrb[60].mxu1 %vm199_vm2, %v2033_v50  ;;  %3246 = vmatprep.subr.bf16.mxu0 %v3479_v15 }
0x1515   :  { %3241 = vmatpush3.bf16.xpose.msra.mxu1 %v2198_v51  ;;  %3242 = vmatprep.mubr.msk.bf16.mxu1 %vm3480_vm1, %v3479_v15 }
0x1516   :  { %3252 = vmatprep.subr.bf16.mxu1 %v3479_v15 }
0x151a   :  { %3237 = vmatmul.mubr.msk.bf16.vlgmr.msra.gmra.mrb[68].mxu0 %vm199_vm2, %v2141_v52 }
0x151b   :  { %3248 = vmatprep.mubr.msk.bf16.mxu0 %vm3480_vm1, %v3479_v15 }
0x151c   :  { %3243 = vmatmul.mubr.msk.bf16.vlgmr.msra.gmra.mrb[64].mxu1 %vm199_vm2, %v2191_v53 }
0x151d   :  { %3254 = vmatprep.mubr.msk.bf16.mxu1 %vm3480_vm1, %v3479_v15 }
0x15e5   :  { %v2076_v54 = vpop.f32.mrb[64].mxu0 }
0x15e6   :  { %v3226_v55 = vpop.f32.mrb[65].mxu0 }
0x15e7   :  { %v2079_v56 = vpop.f32.mrb[66].mxu0  ;;  %v2124_v57 = vpop.f32.mrb[60].mxu1 }
0x15e8   :  { %v3227_v58 = vpop.f32.mrb[67].mxu0  ;;  %v3232_v59 = vpop.f32.mrb[61].mxu1 }
0x15e9   :  { %v2127_v60 = vpop.f32.mrb[62].mxu1 }
0x15ea   :  { %v3233_v61 = vpop.f32.mrb[63].mxu1 }
0x15ed   :  { %v2184_v62 = vpop.f32.mrb[68].mxu0 }
0x15ee   :  { %v2185_v63 = vadd.f32 %v3977_v30, %v2184_v62  ;;  %v3238_v0 = vpop.f32.mrb[69].mxu0 }
0x15ef   :  { %v2187_v47 = vpop.f32.mrb[70].mxu0  ;;  %v2234_v49 = vpop.f32.mrb[64].mxu1 }
0x15f0   :  { %v2240_v1 = vmul.f32 1.442695, %v2185_v63  ;;  %v2235_v2 = vadd.f32 %v3983_v40, %v2234_v49  ;;  %v3239_v3 = vpop.f32.mrb[71].mxu0  ;;  %v3244_v4 = vpop.f32.mrb[65].mxu1 }
0x15f1   :  { %v2237_v31 = vpop.f32.mrb[66].mxu1 }
0x15f2   :  { %3407 = vpow2.f32 %v2240_v1  ;;  %v2242_v32 = vmul.f32 1.442695, %v2235_v2  ;;  %v3245_v6 = vpop.f32.mrb[67].mxu1  ;;  %v3328_v2 = vld [vmem:[%s4201_s10 + $0x18] sm:$0xff]  }
0x15f4   :  { %3409 = vpow2.f32 %v2242_v32 }
0x15fc   :  { %v3408_v7 = vpop.eup %3407 }
0x15fd   :  { %v2244_v10 = vsel %vm199_vm2, %v3408_v7, 0.0 }
0x15fe   :  { %v3410_v12 = vpop.eup %3409  ;;  %2245 = vadd.xlane.f32.xlu0 %v2244_v10 }
0x15ff   :  { %v2247_v30 = vsel %vm199_vm2, %v3410_v12, 0.0 }
0x1600   :  { %2248 = vadd.xlane.f32.xlu1 %v2247_v30  ;;  %v2893_v30 = vld [vmem:[%s4199_s8 + $0x1] ss:$0 sm:$0xff] }
0x1611   :  { %2304 = vrot.lane.b32.xlu1 %v3910_v43, %s4241_s23 }
0x1614   :  { %2256 = vrot.lane.b32.xlu0 %v3908_v38, %s4241_s23 }
0x1615   :  { %1912 = vrot.lane.b32.xlu1 %v4022_v9, %s4242_s21 }
0x1618   :  { %1910 = vrot.lane.b32.xlu0 %v4020_v5, %s4242_s21 }
0x1619   :  { %2134 = vrot.lane.b32.xlu1 %v2124_v57, %s4243_s1 }
0x161c   :  { %2132 = vrot.lane.b32.xlu0 %v2076_v54, %s4243_s1 }
0x168b   :  { %v2246_v40 = vpop.xlane.xlu0 %2245 }
0x168c   :  { %3411 = vrcp.f32 %v2246_v40 }
0x168d   :  { %v2249_v13 = vpop.xlane.xlu1 %2248 }
0x168e   :  { %3413 = vrcp.f32 %v2249_v13 }
0x168f   :  { %v2257_v14 = vpop.permute.xlu0 %2256 }
0x1690   :  { %v2262_v43 = vsel %vm316_vm3, %v2257_v14, 0 }
0x1691   :  { %v2305_v16 = vpop.permute.xlu1 %2304  ;;  %3247 = vmatpush3.bf16.msra.mxu0 %v2262_v43  ;;  %v2894_v43 = vld [vmem:[%s4200_s9 + $0x1] ss:$0 sm:$0xff] }
0x1692   :  { %v2310_v38 = vsel %vm316_vm3, %v2305_v16, 0  ;;  %3258 = vmatprep.subr.bf16.mxu0 %v3479_v15 }
0x1693   :  { %3253 = vmatpush3.bf16.msra.mxu1 %v2310_v38  ;;  %v1911_v9 = vpop.permute.xlu0 %1910 }
0x1694   :  { %1916 = vst.msk [vmem:[#allocation2] sm:$0xff] %vm630_vm4, %v1911_v9  ;;  %3266 = vmatprep.subr.bf16.mxu1 %v3479_v15 }
0x1695   :  { %v1913_v5 = vpop.permute.xlu1 %1912 }
0x1696   :  { %v3412_v17 = vpop.eup %3411  ;;  %1917 = vst.msk [vmem:[#allocation2 + $0x8] sm:$0xff] %vm630_vm4, %v1913_v5 }
0x1697   :  { %v2252_v42 = vmul.f32 %v3412_v17, %v3408_v7  ;;  %v2133_v18 = vpop.permute.xlu0 %2132  ;;  %v3329_v17 = vld [vmem:[%s4203_s12 + $0x20] sm:$0xff]  }
0x1698   :  { %v3414_v39 = vpop.eup %3413  ;;  %2138 = vst.msk [vmem:[#allocation2] sm:$0xff] %vm853_vm5, %v2133_v18  ;;  %v3331_v18 = vld [vmem:[%s4203_s12 + $0x30] sm:$0xff]  }
0x1699   :  { %v2253_v11 = vmul.f32 %v3414_v39, %v3410_v12  ;;  %v2135_v8 = vpop.permute.xlu1 %2134  ;;  %v2254_v19 = vpack.c.bf16 %v2252_v42, %v2252_v42  ;;  %v3330_v42 = vld [vmem:[%s4203_s12 + $0x28] sm:$0xff]   ;;  %v3332_v39 = vld [vmem:[%s4203_s12 + $0x38] sm:$0xff]  }
0x169a   :  { %2139 = vst.msk [vmem:[#allocation2 + $0x8] sm:$0xff] %vm853_vm5, %v2135_v8 }
0x169b   :  { %3249 = vmatmul.mubr.msk.bf16.vlgmr.msra.gmra.mrb[72].mxu0 %vm199_vm2, %v2254_v19  ;;  %v2255_v20 = vpack.c.bf16 %v2253_v11, %v2253_v11  ;;  %v2900_v11 = vld [vmem:[%s4202_s11 + $0x1] ss:$0 sm:$0xff] }
0x169c   :  { %3262 = vmatprep.mubr.msk.bf16.mxu0 %vm3480_vm1, %v3479_v15  ;;  %3259 = vmatpush3.bf16.msra.mxu0 %v3325_v21 }
0x169d   :  { %3255 = vmatmul.mubr.msk.bf16.vlgmr.msra.gmra.mrb[68].mxu1 %vm199_vm2, %v2255_v20  ;;  %3260 = vmatprep.subr.bf16.mxu0 %v3479_v15 }
0x169e   :  { %3270 = vmatprep.mubr.msk.bf16.mxu1 %vm3480_vm1, %v3479_v15 }
0x16a0   :  { %3261 = vmatpush3.bf16.msra.mxu0 %v3326_v22 }
0x16a1   :  { %3274 = vmatprep.subr.bf16.mxu0 %v3479_v15 }
0x176e   :  { %v2298_v23 = vpop.f32.mrb[72].mxu0 }
0x176f   :  { %2354 = vrot.lane.b32.xlu0 %v2298_v23, %s4244_s29  ;;  %v3250_v24 = vpop.f32.mrb[73].mxu0 }
0x1770   :  { %v2301_v25 = vpop.f32.mrb[74].mxu0  ;;  %v2346_v26 = vpop.f32.mrb[68].mxu1 }
0x1771   :  { %2356 = vrot.lane.b32.xlu1 %v2346_v26, %s4244_s29  ;;  %v3251_v27 = vpop.f32.mrb[75].mxu0  ;;  %v3256_v33 = vpop.f32.mrb[69].mxu1 }
0x1772   :  { %v2349_v34 = vpop.f32.mrb[70].mxu1 }
0x1773   :  { %v3257_v35 = vpop.f32.mrb[71].mxu1 }
0x17e1   :  { %v2355_v36 = vpop.permute.xlu0 %2354 }
0x17e2   :  { %2360 = vst.msk [vmem:[#allocation2] sm:$0xff] %vm1076_vm6, %v2355_v36 }
0x17e3   :  { %v2357_v37 = vpop.permute.xlu1 %2356 }
0x17e4   :  { %2361 = vst.msk [vmem:[#allocation2 + $0x8] sm:$0xff] %vm1076_vm6, %v2357_v37 }
0x17e9   :  { %v2362_v41 = vld [vmem:[#allocation2] sm:$0xff] }
0x17eb   :  { %v2363_v44 = vld [vmem:[#allocation2 + $0x8] sm:$0xff] }
0x17ec   :  { %v2364_v45 = vpack.c.bf16 %v2363_v44, %v2362_v41 }
0x17ee   :  { %3263 = vmatmul.mubr.msk.bf16.vlgmr.msra.gmra.mrb[76].mxu0 %vm70_vm0, %v2364_v45 }
0x17ef   :  { %3282 = vmatprep.mubr.msk.bf16.mxu0 %vm3480_vm1, %v3479_v15  ;;  %3275 = vmatpush3.bf16.msra.mxu0 %v3329_v17 }
0x17f0   :  { %3276 = vmatprep.subr.bf16.mxu0 %v3479_v15 }
0x17f3   :  { %3277 = vmatpush3.bf16.msra.mxu0 %v3330_v42 }
0x17f4   :  { %3278 = vmatprep.subr.bf16.mxu0 %v3479_v15 }
0x17f7   :  { %3279 = vmatpush3.bf16.msra.mxu0 %v3331_v18 }
0x17f8   :  { %3280 = vmatprep.subr.bf16.mxu0 %v3479_v15 }
0x17fb   :  { %3281 = vmatpush3.bf16.msra.mxu0 %v3332_v39 }
0x18c1   :  { %v2427_v48 = vpop.f32.mrb[76].mxu0 }
0x18c2   :  { %v2428_v50 = vadd.f32 %v2887_v46, %v2427_v48  ;;  %v3264_v51 = vpop.f32.mrb[77].mxu0 }
0x18c3   :  { %v2430_v52 = vpop.f32.mrb[78].mxu0 }
0x18c4   :  { %v2431_v53 = vadd.f32 %v2887_v46, %v2430_v52  ;;  %v3265_v54 = vpop.f32.mrb[79].mxu0  ;;  %v2434_v55 = vadd.f32 %v2428_v50, %v3896_v28 }
0x18c6   :  { %v2440_v56 = vsel %vm70_vm0, %v2434_v55, 0.0  ;;  %v2435_v57 = vadd.f32 %v2431_v53, %v3898_v29  ;;  %v3327_v29 = vld [vmem:[%s4201_s10 + $0x10] sm:$0xff]  }
0x18c7   :  { %2441 = vadd.xlane.f32.xlu0 %v2440_v56  ;;  %3267 = vmatpush3.bf16.msra.mxu1 %v3327_v29 }
0x18c8   :  { %v2443_v58 = vsel %vm70_vm0, %v2435_v57, 0.0  ;;  %3268 = vmatprep.subr.bf16.mxu1 %v3479_v15 }
0x18c9   :  { %2444 = vadd.xlane.f32.xlu1 %v2443_v58 }
0x18cb   :  { %3269 = vmatpush3.bf16.msra.mxu1 %v3328_v2 }
0x18cc   :  { %3286 = vmatprep.subr.bf16.mxu1 %v3479_v15 }
0x1954   :  { %v2442_v59 = vpop.xlane.xlu0 %2441 }
0x1955   :  { %v2446_v60 = vmul.f32 0.03125, %v2442_v59 }
0x1956   :  { %v2445_v61 = vpop.xlane.xlu1 %2444 }
0x1957   :  { %v2448_v62 = vsub.f32 %v2434_v55, %v2446_v60  ;;  %v2447_v63 = vmul.f32 0.03125, %v2445_v61  ;;  %v2913_v55 = vld [vmem:[%s4204_s13 + $0x1] ss:$0 sm:$0xff] }
0x1959   :  { %v2449_v0 = vsub.f32 %v2435_v57, %v2447_v63  ;;  %v2450_v47 = vmul.f32 %v2448_v62, %v2448_v62 }
0x195b   :  { %v2452_v49 = vsel %vm70_vm0, %v2450_v47, 0.0  ;;  %v2451_v1 = vmul.f32 %v2449_v0, %v2449_v0 }
0x195c   :  { %2453 = vadd.xlane.f32.xlu0 %v2452_v49 }
0x195d   :  { %v2455_v28 = vsel %vm70_vm0, %v2451_v1, 0.0 }
0x1960   :  { %2456 = vadd.xlane.f32.xlu0 %v2455_v28 }
0x19e9   :  { %v2454_v3 = vpop.xlane.xlu0 %2453 }
0x19ea   :  { %v2458_v4 = vmul.f32 0.03125, %v2454_v3 }
0x19ec   :  { %v2460_v31 = vadd.f32 1e-12, %v2458_v4 }
0x19ed   :  { %v2457_v32 = vpop.xlane.xlu0 %2456 }
0x19ee   :  { %3415 = vrsqrt.f32 %v2460_v31  ;;  %v2459_v6 = vmul.f32 0.03125, %v2457_v32 }
0x19f0   :  { %v2461_v7 = vadd.f32 1e-12, %v2459_v6 }
0x19f2   :  { %3417 = vrsqrt.f32 %v2461_v7  ;;  %v3333_v7 = vld [vmem:[%s4207_s16] sm:$0xff]  }
0x19f8   :  { %v3416_v10 = vpop.eup %3415 }
0x19f9   :  { %v2464_v12 = vmul.f32 %v3416_v10, %v2448_v62  ;;  %v3334_v10 = vld [vmem:[%s4207_s16 + $0x8] sm:$0xff]  }
0x19fb   :  { %v2472_v13 = vmul.f32 %v2893_v30, %v2464_v12 }
0x19fc   :  { %v3418_v40 = vpop.eup %3417 }
0x19fd   :  { %v2465_v14 = vmul.f32 %v3418_v40, %v2449_v0  ;;  %v2480_v38 = vadd.f32 %v2894_v43, %v2472_v13 }
0x19ff   :  { %v2473_v16 = vmul.f32 %v2893_v30, %v2465_v14 }
0x1a01   :  { %v2481_v9 = vadd.f32 %v2894_v43, %v2473_v16 }
0x1a03   :  { %v2482_v5 = vpack.c.bf16 %v2481_v9, %v2480_v38 }
0x1a05   :  { %3271 = vmatmul.mubr.msk.bf16.vlgmr.msra.gmra.mrb[72].mxu1 %vm70_vm0, %v2482_v5 }
0x1a06   :  { %3290 = vmatprep.mubr.msk.bf16.mxu1 %vm3480_vm1, %v3479_v15  ;;  %3287 = vmatpush3.bf16.msra.mxu1 %v3333_v7 }
0x1a07   :  { %3288 = vmatprep.subr.bf16.mxu1 %v3479_v15  ;;  %v2922_v15 = vld [vmem:[%s4206_s15 + $0x1] ss:$0 sm:$0xff] }
0x1a0a   :  { %3289 = vmatpush3.bf16.msra.mxu1 %v3334_v10 }
0x1ad8   :  { %v2545_v8 = vpop.f32.mrb[72].mxu1 }
0x1ad9   :  { %v2546_v19 = vadd.f32 %v2900_v11, %v2545_v8  ;;  %v3272_v20 = vpop.f32.mrb[73].mxu1 }
0x1ada   :  { %v2548_v21 = vpop.f32.mrb[74].mxu1 }
0x1adb   :  { %v2554_v22 = vmul.f32 0.044715, %v2546_v19  ;;  %v2549_v23 = vadd.f32 %v2900_v11, %v2548_v21  ;;  %v3273_v24 = vpop.f32.mrb[75].mxu1  ;;  %v2552_v48 = vmul.f32 0.5, %v2546_v19 }
0x1add   :  { %v2556_v25 = vmul.f32 %v2554_v22, %v2546_v19  ;;  %v2555_v26 = vmul.f32 0.044715, %v2549_v23  ;;  %v2553_v50 = vmul.f32 0.5, %v2549_v23 }
0x1adf   :  { %v2558_v27 = vmul.f32 %v2556_v25, %v2546_v19  ;;  %v2557_v33 = vmul.f32 %v2555_v26, %v2549_v23 }
0x1ae1   :  { %v2560_v34 = vadd.f32 %v2558_v27, %v2546_v19  ;;  %v2559_v35 = vmul.f32 %v2557_v33, %v2549_v23 }
0x1ae3   :  { %v2562_v36 = vmul.f32 0.7978846, %v2560_v34  ;;  %v2561_v37 = vadd.f32 %v2559_v35, %v2549_v23 }
0x1ae5   :  { %3419 = vtanh.f32 %v2562_v36  ;;  %v2563_v41 = vmul.f32 0.7978846, %v2561_v37 }
0x1ae7   :  { %3421 = vtanh.f32 %v2563_v41 }
0x1aef   :  { %v3420_v44 = vpop.eup %3419 }
0x1af0   :  { %v2566_v45 = vadd.f32 1.0, %v3420_v44 }
0x1af1   :  { %v3422_v46 = vpop.eup %3421 }
0x1af2   :  { %v2567_v51 = vadd.f32 1.0, %v3422_v46  ;;  %v2568_v52 = vmul.f32 %v2566_v45, %v2552_v48 }
0x1af4   :  { %v2569_v53 = vmul.f32 %v2567_v51, %v2553_v50 }
0x1af6   :  { %v2570_v54 = vpack.c.bf16 %v2569_v53, %v2568_v52 }
0x1af8   :  { %3283 = vmatmul.mubr.msk.bf16.vlgmr.msra.gmra.mrb[80].mxu0 %vm1321_vm7, %v2570_v54 }
0x1bcb   :  { %v2649_v56 = vpop.f32.mrb[80].mxu0 }
0x1bcc   :  { %v2650_v57 = vadd.f32 %v2913_v55, %v2649_v56  ;;  %v3284_v58 = vpop.f32.mrb[81].mxu0 }
0x1bcd   :  { %v2652_v59 = vpop.f32.mrb[82].mxu0 }
0x1bce   :  { %v2653_v60 = vadd.f32 %v2913_v55, %v2652_v59  ;;  %v3285_v61 = vpop.f32.mrb[83].mxu0  ;;  %v2656_v62 = vadd.f32 %v2650_v57, %v2480_v38  ;;  %v2921_v38 = vld [vmem:[%s4205_s14 + $0x1] ss:$0 sm:$0xff]  ;;  %s3495_s14 = smov [#allocation3]  }
0x1bcf   :  { %s2790_s15 = sshll.u32 %s3495_s14, 4  ;;  %s2791_s15 = int_to_ptr.vmem [resolvable:$true] %s2790_s15 }
0x1bd0   :  { %v2662_v63 = vsel %vm70_vm0, %v2656_v62, 0.0  ;;  %v2657_v0 = vadd.f32 %v2653_v60, %v2481_v9  ;;  %s3431_s24 = scalar_lea.vmem %s2791_s15, 256  ;;  %p3436_p1 = scmp.lt.s32.totalorder %s2791_s15, %s2791_s15 }
0x1bd1   :  { %2663 = vadd.xlane.f32.xlu1 %v2662_v63  ;;  %p3432_p0 = scmp.ne.s32.totalorder %s2791_s15, %s3431_s24  ;;  %p3437_p2 = scmp.lt.s32.totalorder %s3431_s24, %s3431_s24 }
0x1bd2   :  { %v2665_v47 = vsel %vm70_vm0, %v2657_v0, 0.0 }
0x1bd3   :  { %2666 = vadd.xlane.f32.xlu0 %v2665_v47  ;;  %p3438_p3 = por %p3437_p2, %p3436_p1 }
0x1bd5   :  { %p3439_p4 = pnand %p3438_p3, %p3432_p0 }
0x1c5e   :  { %v2664_v49 = vpop.xlane.xlu1 %2663 }
0x1c5f   :  { %v2668_v1 = vmul.f32 0.03125, %v2664_v49 }
0x1c60   :  { %v2667_v28 = vpop.xlane.xlu0 %2666 }
0x1c61   :  { %v2670_v29 = vsub.f32 %v2656_v62, %v2668_v1  ;;  %v2669_v2 = vmul.f32 0.03125, %v2667_v28 }
0x1c63   :  { %v2671_v3 = vsub.f32 %v2657_v0, %v2669_v2  ;;  %v2672_v4 = vmul.f32 %v2670_v29, %v2670_v29 }
0x1c65   :  { %v2674_v31 = vsel %vm70_vm0, %v2672_v4, 0.0  ;;  %v2673_v32 = vmul.f32 %v2671_v3, %v2671_v3 }
0x1c66   :  { %2675 = vadd.xlane.f32.xlu1 %v2674_v31 }
0x1c67   :  { %v2677_v6 = vsel %vm70_vm0, %v2673_v32, 0.0 }
0x1c68   :  { %2678 = vadd.xlane.f32.xlu0 %v2677_v6 }
0x1cf3   :  { %v2676_v12 = vpop.xlane.xlu1 %2675 }
0x1cf4   :  { %v2680_v30 = vmul.f32 0.03125, %v2676_v12 }
0x1cf5   :  { %v2679_v40 = vpop.xlane.xlu0 %2678 }
0x1cf6   :  { %v2682_v13 = vadd.f32 1e-12, %v2680_v30  ;;  %v2681_v14 = vmul.f32 0.03125, %v2679_v40 }
0x1cf8   :  { %3423 = vrsqrt.f32 %v2682_v13  ;;  %v2683_v43 = vadd.f32 1e-12, %v2681_v14 }
0x1cfa   :  { %3425 = vrsqrt.f32 %v2683_v43 }
0x1d02   :  { %v3424_v16 = vpop.eup %3423 }
0x1d03   :  { %v2686_v9 = vmul.f32 %v3424_v16, %v2670_v29 }
0x1d04   :  { %v3426_v5 = vpop.eup %3425 }
0x1d05   :  { %v2694_v17 = vmul.f32 %v2921_v38, %v2686_v9  ;;  %v2687_v42 = vmul.f32 %v3426_v5, %v2671_v3 }
0x1d07   :  { %v2702_v18 = vadd.f32 %v2922_v15, %v2694_v17  ;;  %v2695_v39 = vmul.f32 %v2921_v38, %v2687_v42 }
0x1d09   :  { %2704 = vst.msk [vmem:[#allocation3] sm:$0xff] %vm70_vm0, %v2702_v18  ;;  %v2703_v11 = vadd.f32 %v2922_v15, %v2695_v39  ;;  %v2706_v8 = vpack.c.bf16 %v2702_v18, %v2702_v18 }
0x1d0b   :  { %2705 = vst.msk [vmem:[#allocation3 + $0x8] sm:$0xff] %vm70_vm0, %v2703_v11  ;;  %v2707_v19 = vpack.c.bf16 %v2703_v11, %v2703_v11  ;;  %v2721_v21 = vunpack.c.l.b16 %v2706_v8 }
0x1d0d   :  { %v2722_v20 = vunpack.c.l.b16 %v2707_v19 }
0x1d0f   :  { %v2723_v22 = vrot.slane %v2722_v20, 7 }
0x1d11   :  { %v2725_v23 = vsel %vm2724_vm8, %v2723_v22, %v2721_v21 }
0x1d12   :  { %v2726_v24 = vpack.c.b16 %v2725_v23, %v2725_v23 }
0x1d14   :  { %3291 = vmatmul.mubr.msk.bf16.vlgmr.msra.gmra.mrb[76].mxu1 %vm70_vm0, %v2726_v24 }
0x1d15   :  { %3442 = shalt.err (!%p3439_p4)
}
0x1d16   :  { %s3443_s10 = scalar_lea.hbm %s4209_s18, 256 }
0x1d17   :  { %p3444_p5 = scmp.ne.s32.totalorder %s4209_s18, %s3443_s10  ;;  %p3447_p6 = scmp.lt.u32.totalorder %s3443_s10, %s4209_s18 }
0x1d19   :  { %p3449_p7 = pnand %p3447_p6, %p3444_p5 }
0x1d1b   :  { %3452 = shalt.err (!%p3449_p7)
}
0x1d1c   :  { %s3496_s23 = smov 128   ;;  %v2923_v25 = vld [vmem:[%s4208_s17] ss:$0 sm:$0xff]  ;;  %s3497_s4 = smov [#allocation5]   ;;  %vm2783_vm9 = vcmask 254976  }
0x1d1d   :  { %2796 = dma.vmem_to_hbm [thread:$0]  %s2791_s15, 256, %s4209_s18, [#allocation4], %s3496_s23, %s3496_s23, %s4242_s21  }
0x1d1e   :  { %s2803_s28 = sshll.u32 %s3497_s4, 4  ;;  %s2804_s28 = int_to_ptr.vmem [resolvable:$true] %s2803_s28 }
0x1d1f   :  { %s3453_s11 = scalar_lea.vmem %s2804_s28, 32  ;;  %p3458_p9 = scmp.lt.s32.totalorder %s2804_s28, %s2804_s28 }
0x1d20   :  { %p3454_p8 = scmp.ne.s32.totalorder %s2804_s28, %s3453_s11  ;;  %p3459_p10 = scmp.lt.s32.totalorder %s3453_s11, %s3453_s11 }
0x1d22   :  { %p3460_p11 = por %p3459_p10, %p3458_p9 }
0x1d24   :  { %p3461_p12 = pnand %p3460_p11, %p3454_p8 }
0x1de7   :  { %v2776_v26 = vpop.f32.mrb[76].mxu1 }
0x1de8   :  { %v2777_v27 = vadd.f32 %v2923_v25, %v2776_v26  ;;  %v3292_v33 = vpop.f32.mrb[77].mxu1 }
0x1de9   :  { %v2779_v34 = vpop.f32.mrb[78].mxu1 }
0x1dea   :  { %3427 = vtanh.f32 %v2777_v27  ;;  %v3293_v35 = vpop.f32.mrb[79].mxu1 }
0x1df4   :  { %v3428_v36 = vpop.eup %3427 }
0x1df5   :  { %2784 = vst.msk [vmem:[#allocation5] sm:$0x3] %vm2783_vm9, %v3428_v36 }
0x1df6   :  { %3464 = shalt.err (!%p3461_p12)
}
0x1df7   :  { %s3465_s21 = scalar_lea.hbm %s4210_s19, 32 }
0x1df8   :  { %p3466_p13 = scmp.ne.s32.totalorder %s4210_s19, %s3465_s21  ;;  %p3469_p0 = scmp.lt.u32.totalorder %s3465_s21, %s4210_s19 }
0x1dfa   :  { %p3471_p1 = pnand %p3469_p0, %p3466_p13 }
0x1dfc   :  { %3474 = shalt.err (!%p3471_p1)
}
0x1dfd   :  { %2806 = dma.vmem_to_hbm [thread:$0]  %s2804_s28, 32, %s4210_s19, [#allocation6]  }
0x1dfe   :  { %3475 = dma.done.wait [#allocation4], 256  }
0x1dff   :  { %3476 = vsyncadd [#allocation4], 4294967040 }
0x1e00   :  { %3477 = dma.done.wait [#allocation6], 32  }
0x1e01   :  { %3478 = vsyncadd [#allocation6], 4294967264 }
0x1e02   :  { %2813 = vsyncpa [#allocation4], 1 }
0x1e03   :  { %2814 = vsyncpa [#allocation6], 1 }

</bundles_post_ra>
